<compile_context>
chip_gen: v5e
topology: v5e:2x2
jax: 0.10.0
libtpu: 0.0.40
codegen_flags: <defaults>
</compile_context>

<pallas_src>
import functools

import jax
import jax.numpy as jnp
from jax.experimental import pallas as pl
from jax.experimental.pallas import tpu as pltpu

EPS = 1e-5  # InstanceNorm2d default eps


def _round_up(x, m):
    return (x + m - 1) // m * m


# ---------------------------------------------------------------------------
# Fused kernel: whole block per batch sample.
# Frame convention: flat spatial position p = r * Wp + c of the (Hp, Wp)
# reflection-padded grid; pixel (i, j) lives at the interior position
# (i+1) * Wp + (j+1).  Lane width S = round_up(Hp*Wp, 128).
# ---------------------------------------------------------------------------
def _fused_kernel(H, W,
                  x_ref, zb1_ref, zb2_ref, col_ref, row_ref,
                  w31_ref, wAx1_ref, wB1_ref, bB1_ref,
                  w32_ref, wAx2_ref, wB2_ref, bB2_ref,
                  o_ref, pad_ref):
    C, S = o_ref.shape
    Hp, Wp = H + 2, W + 2
    M = 2 * Wp                       # margin inside the scratch frame
    Sw = pad_ref.shape[1]
    inv_n = 1.0 / float(H * W)

    col = col_ref[...]               # (1, S) int32, -1 on tail lanes
    row = row_ref[...]               # (1, S) int32, -1 on tail lanes

    def bmask(m):                    # hoist broadcasts (used by both halves)
        return jnp.broadcast_to(m, (C, S))

    m_left = bmask(col == 0)
    m_right = bmask(col == Wp - 1)
    m_top = bmask(row == 0)
    m_bot = bmask(row == Hp - 1)
    m_valid = bmask((col >= 1) & (col <= W) & (row >= 1) & (row <= H))

    # Margins / tail are only ever read for border & tail outputs that get
    # masked/discarded, but keep them finite (never written afterwards).
    pad_ref[:, :M] = jnp.zeros((C, M), pad_ref.dtype)
    tail = Sw - M - S
    if tail > 0:
        pad_ref[:, M + S:] = jnp.zeros((C, tail), pad_ref.dtype)

    def win(d):
        # window[p] = frame[p + d]  (static, possibly unaligned, VMEM slice),
        # already bf16 => directly usable as an MXU operand.
        return pad_ref[:, M + d:M + d + S]

    def reflect_pad(act):
        # ReflectionPad2d(1): fill the border lanes of the frame from the
        # interior.  Columns first, then rows (so corners reflect correctly).
        pad_ref[:, M:M + S] = act.astype(pad_ref.dtype)
        a = jnp.where(m_left, win(2), act)        # col 0   <- col 2
        a = jnp.where(m_right, win(-2), a)        # col W+1 <- col W-1
        pad_ref[:, M:M + S] = a.astype(pad_ref.dtype)  # row fill reads col-filled
        a = jnp.where(m_top, win(2 * Wp), a)      # row 0   <- row 2
        a = jnp.where(m_bot, win(-2 * Wp), a)     # row H+1 <- row H-1
        pad_ref[:, M:M + S] = a.astype(pad_ref.dtype)  # conv windows read this

    def conv3x3_instnorm(w_ref):
        # 3x3 conv = 9 shifted-window GEMMs (bf16 operands, f32 accumulation),
        # followed by InstanceNorm2d(affine=False) with masked one-pass stats.
        # Conv bias is omitted on purpose: IN cancels a per-channel constant
        # bias exactly (mean shifts by b, variance unchanged).
        acc = jnp.zeros((C, S), jnp.float32)
        for t in range(9):
            d = (t // 3 - 1) * Wp + (t % 3 - 1)
            acc = acc + jnp.dot(w_ref[t], win(d),
                                preferred_element_type=jnp.float32)
        s1 = jnp.sum(jnp.where(m_valid, acc, 0.0), axis=1, keepdims=True)
        s2 = jnp.sum(jnp.where(m_valid, acc * acc, 0.0), axis=1, keepdims=True)
        mean = s1 * inv_n
        var = jnp.maximum(s2 * inv_n - mean * mean, 0.0)
        return (acc - mean) * jax.lax.rsqrt(var + EPS)

    def blk1x1(normed, wAx_ref, zb_ref, wB_ref, bB_ref):
        # cat([normed, z]) @ W  ==  W[:, :C] @ normed + (W[:, C:] @ z + b),
        # with the z part folded into the per-sample bias zb host-side.
        h = jnp.dot(wAx_ref[...], normed.astype(jnp.bfloat16),
                    preferred_element_type=jnp.float32) + zb_ref[...]
        h = jnp.maximum(h, 0.0)
        o = jnp.dot(wB_ref[...], h.astype(jnp.bfloat16),
                    preferred_element_type=jnp.float32) + bB_ref[...]
        return jnp.maximum(o, 0.0)

    x = x_ref[...]                                # zero-padded frame, f32
    reflect_pad(x)
    o1 = conv3x3_instnorm(w31_ref)
    o2 = blk1x1(o1, wAx1_ref, zb1_ref, wB1_ref, bB1_ref)
    reflect_pad(o2)                               # o2 stays on-chip (VMEM)
    o3 = conv3x3_instnorm(w32_ref)
    o4 = blk1x1(o3, wAx2_ref, zb2_ref, wB2_ref, bB2_ref)
    o_ref[...] = o4 + x                           # residual (interior exact)


# ---------------------------------------------------------------------------
# Host-side wrapper: frame embedding, weight re-layout, z-bias folding.
# ---------------------------------------------------------------------------
def mis_ins_res_block(x, z, params):
    """x: (N, dim, H, W), z: (N, dim_extra) -> (N, dim, H, W)."""
    N, C, H, W = x.shape
    Cz = z.shape[1]
    Ct = C + Cz
    Hp, Wp = H + 2, W + 2
    S = _round_up(Hp * Wp, 128)       # lane-dense frame width
    M = 2 * Wp
    Sw = _round_up(2 * M + S, 128)    # scratch frame width (with margins)

    # x embedded into the zero-padded frame (the kernel does the reflection).
    xf = jnp.pad(x.astype(jnp.float32), ((0, 0), (0, 0), (1, 1), (1, 1)))
    xf = xf.reshape(N, C, Hp * Wp)
    xf = jnp.pad(xf, ((0, 0), (0, 0), (0, S - Hp * Wp)))

    # Fold z and the first-1x1 bias into a per-sample bias (Ct, 1).
    z32 = z.astype(jnp.float32)
    zb1 = (z32 @ params["blk1_wA"][:, C:].T + params["blk1_bA"]).reshape(N, Ct, 1)
    zb2 = (z32 @ params["blk2_wA"][:, C:].T + params["blk2_bA"]).reshape(N, Ct, 1)

    # Row / column index of each frame lane (-1 on the round-up tail).
    pos = jnp.arange(S, dtype=jnp.int32)
    in_frame = pos < Hp * Wp
    row_idx = jnp.where(in_frame, pos // Wp, -1).reshape(1, S)
    col_idx = jnp.where(in_frame, pos % Wp, -1).reshape(1, S)

    def w3taps(w):  # (Cout, Cin, 3, 3) -> (9, Cout, Cin), bf16 MXU operands
        return jnp.transpose(w, (2, 3, 0, 1)).reshape(9, w.shape[0], w.shape[1]
                                                      ).astype(jnp.bfloat16)

    # NOTE: conv3x3 biases (params["conv1_b"]/["conv2_b"]) are NOT passed to
    # the kernel: InstanceNorm(affine=False) cancels them exactly.
    w31 = w3taps(params["conv1_w"])
    w32 = w3taps(params["conv2_w"])
    wAx1 = params["blk1_wA"][:, :C].astype(jnp.bfloat16)
    wAx2 = params["blk2_wA"][:, :C].astype(jnp.bfloat16)
    wB1 = params["blk1_wB"].astype(jnp.bfloat16)
    wB2 = params["blk2_wB"].astype(jnp.bfloat16)
    bB1 = params["blk1_bB"].reshape(C, 1).astype(jnp.float32)
    bB2 = params["blk2_bB"].reshape(C, 1).astype(jnp.float32)

    def per_sample(shape):
        n = len(shape)
        return pl.BlockSpec((None,) + shape, lambda b, n=n: (b,) + (0,) * n)

    def shared(shape):
        n = len(shape)
        return pl.BlockSpec(shape, lambda b, n=n: (0,) * n)

    args = [xf, zb1, zb2, col_idx, row_idx,
            w31, wAx1, wB1, bB1,
            w32, wAx2, wB2, bB2]
    in_specs = [per_sample((C, S)), per_sample((Ct, 1)), per_sample((Ct, 1)),
                shared((1, S)), shared((1, S)),
                shared((9, C, C)), shared((Ct, C)), shared((C, Ct)),
                shared((C, 1)),
                shared((9, C, C)), shared((Ct, C)), shared((C, Ct)),
                shared((C, 1))]

    flops_per_half = 2 * S * (9 * C * C + Ct * C + C * Ct)
    flops = int(N * 2 * flops_per_half)
    bytes_accessed = int(sum(int(a.size) * a.dtype.itemsize for a in args)
                         + N * C * S * 4)

    out = pl.pallas_call(
        functools.partial(_fused_kernel, H, W),
        out_shape=jax.ShapeDtypeStruct((N, C, S), jnp.float32),
        grid=(N,),
        in_specs=in_specs,
        out_specs=per_sample((C, S)),
        scratch_shapes=[pltpu.VMEM((C, Sw), jnp.bfloat16)],
        compiler_params=pltpu.CompilerParams(
            dimension_semantics=("parallel",),
            vmem_limit_bytes=64 * 1024 * 1024),
        cost_estimate=pl.CostEstimate(flops=flops,
                                      transcendentals=int(2 * N * C),
                                      bytes_accessed=bytes_accessed),
    )(*args)

    # Extract the interior (i+1, j+1) of the frame -> pixel (i, j).
    out = out[:, :, :Hp * Wp].reshape(N, C, Hp, Wp)[:, :, 1:H + 1, 1:W + 1]
    return out


# ---------------------------------------------------------------------------
# Pure-JAX reference (mirrors the PyTorch module) for a correctness check.
# ---------------------------------------------------------------------------
def reference_forward(x, z, params):
    HIGHEST = jax.lax.Precision.HIGHEST

    def conv3x3(t, w, b):
        tp = jnp.pad(t, ((0, 0), (0, 0), (1, 1), (1, 1)), mode="reflect")
        y = jax.lax.conv_general_dilated(
            tp, w, (1, 1), "VALID",
            dimension_numbers=("NCHW", "OIHW", "NCHW"), precision=HIGHEST)
        return y + b[None, :, None, None]

    def inorm(t):
        m = jnp.mean(t, axis=(2, 3), keepdims=True)
        v = jnp.mean(jnp.square(t - m), axis=(2, 3), keepdims=True)
        return (t - m) * jax.lax.rsqrt(v + EPS)

    def conv1x1(t, w, b):
        y = jnp.einsum("oc,nchw->nohw", w, t, precision=HIGHEST)
        return y + b[None, :, None, None]

    N, _, H, W = x.shape
    z_exp = jnp.broadcast_to(z[:, :, None, None], (N, z.shape[1], H, W))

    o1 = inorm(conv3x3(x, params["conv1_w"], params["conv1_b"]))
    t1 = jnp.concatenate([o1, z_exp], axis=1)
    o2 = jax.nn.relu(conv1x1(
        jax.nn.relu(conv1x1(t1, params["blk1_wA"], params["blk1_bA"])),
        params["blk1_wB"], params["blk1_bB"]))

    o3 = inorm(conv3x3(o2, params["conv2_w"], params["conv2_b"]))
    t2 = jnp.concatenate([o3, z_exp], axis=1)
    out = jax.nn.relu(conv1x1(
        jax.nn.relu(conv1x1(t2, params["blk2_wA"], params["blk2_bA"])),
        params["blk2_wB"], params["blk2_bB"]))
    return out + x


# ---------------------------------------------------------------------------
# Deterministic synthetic parameters (gaussian init, std=0.02 conv weights).
# ---------------------------------------------------------------------------
def init_params(key, dim, dim_extra):
    keys = jax.random.split(key, 12)
    dt = dim + dim_extra

    def w(k, shape, std=0.02):
        return jax.random.normal(k, shape, jnp.float32) * std

    return dict(
        conv1_w=w(keys[0], (dim, dim, 3, 3)),
        conv1_b=w(keys[1], (dim,), 0.01),
        conv2_w=w(keys[2], (dim, dim, 3, 3)),
        conv2_b=w(keys[3], (dim,), 0.01),
        blk1_wA=w(keys[4], (dt, dt)),
        blk1_bA=w(keys[5], (dt,), 0.01),
        blk1_wB=w(keys[6], (dim, dt)),
        blk1_bB=w(keys[7], (dim,), 0.01),
        blk2_wA=w(keys[8], (dt, dt)),
        blk2_bA=w(keys[9], (dt,), 0.01),
        blk2_wB=w(keys[10], (dim, dt)),
        blk2_bB=w(keys[11], (dim,), 0.01),
    )


if __name__ == "__main__":
    key = jax.random.PRNGKey(0)
    kx, kz, kp = jax.random.split(key, 3)

    N, dim, dim_extra, H, W = 2, 4, 4, 16, 16
    x = jax.random.normal(kx, (N, dim, H, W), jnp.float32)
    z = jax.random.normal(kz, (N, dim_extra), jnp.float32)
    params = init_params(kp, dim, dim_extra)

    fwd = jax.jit(mis_ins_res_block)
    out = jax.block_until_ready(fwd(x, z, params))
    ref = jax.block_until_ready(jax.jit(reference_forward)(x, z, params))

    assert out.shape == x.shape and out.dtype == jnp.float32
    max_diff = float(jnp.max(jnp.abs(out - ref)))
    if max_diff > 2e-3:
        raise AssertionError(f"Pallas output mismatch vs reference: {max_diff}")
    print("KERNEL_OK")
</pallas_src>

<mosaic_0001>
module attributes {stable_mosaic.version = 11 : i64} {
  func.func @_fused_kernel(%arg0: i32, %arg1: memref<1x4x384xf32, #tpu.memory_space<vmem>>, %arg2: memref<1x8x1xf32, #tpu.memory_space<vmem>>, %arg3: memref<1x8x1xf32, #tpu.memory_space<vmem>>, %arg4: memref<1x384xi32, #tpu.memory_space<vmem>>, %arg5: memref<1x384xi32, #tpu.memory_space<vmem>>, %arg6: memref<9x4x4xbf16, #tpu.memory_space<vmem>>, %arg7: memref<8x4xbf16, #tpu.memory_space<vmem>>, %arg8: memref<4x8xbf16, #tpu.memory_space<vmem>>, %arg9: memref<4x1xf32, #tpu.memory_space<vmem>>, %arg10: memref<9x4x4xbf16, #tpu.memory_space<vmem>>, %arg11: memref<8x4xbf16, #tpu.memory_space<vmem>>, %arg12: memref<4x8xbf16, #tpu.memory_space<vmem>>, %arg13: memref<4x1xf32, #tpu.memory_space<vmem>>, %arg14: memref<1x4x384xf32, #tpu.memory_space<vmem>>, %arg15: memref<4x512xbf16, #tpu.memory_space<vmem>>) attributes {dimension_semantics = [#tpu.dimension_semantics<parallel>], iteration_bounds = array<i64: 2>, scalar_prefetch = 0 : i64, scratch_operands = 1 : i64, tpu.core_type = #tpu.core_type<tc>, window_params = [{transform_indices = @transform_0, window_bounds = array<i64: 1, 4, 384>}, {transform_indices = @transform_1, window_bounds = array<i64: 1, 8, 1>}, {transform_indices = @transform_2, window_bounds = array<i64: 1, 8, 1>}, {pipeline_mode = #tpu.pipeline_mode<synchronous>, transform_indices = @transform_3, window_bounds = array<i64: 1, 384>}, {pipeline_mode = #tpu.pipeline_mode<synchronous>, transform_indices = @transform_4, window_bounds = array<i64: 1, 384>}, {pipeline_mode = #tpu.pipeline_mode<synchronous>, transform_indices = @transform_5, window_bounds = array<i64: 9, 4, 4>}, {pipeline_mode = #tpu.pipeline_mode<synchronous>, transform_indices = @transform_6, window_bounds = array<i64: 8, 4>}, {pipeline_mode = #tpu.pipeline_mode<synchronous>, transform_indices = @transform_7, window_bounds = array<i64: 4, 8>}, {pipeline_mode = #tpu.pipeline_mode<synchronous>, transform_indices = @transform_8, window_bounds = array<i64: 4, 1>}, {pipeline_mode = #tpu.pipeline_mode<synchronous>, transform_indices = @transform_9, window_bounds = array<i64: 9, 4, 4>}, {pipeline_mode = #tpu.pipeline_mode<synchronous>, transform_indices = @transform_10, window_bounds = array<i64: 8, 4>}, {pipeline_mode = #tpu.pipeline_mode<synchronous>, transform_indices = @transform_11, window_bounds = array<i64: 4, 8>}, {pipeline_mode = #tpu.pipeline_mode<synchronous>, transform_indices = @transform_12, window_bounds = array<i64: 4, 1>}, {transform_indices = @transform_13, window_bounds = array<i64: 1, 4, 384>}]} {
    %c0 = arith.constant 0 : index
    %c0_0 = arith.constant 0 : index
    %0 = vector.load %arg4[%c0, %c0_0] : memref<1x384xi32, #tpu.memory_space<vmem>>, vector<1x384xi32>
    %c0_1 = arith.constant 0 : index
    %c0_2 = arith.constant 0 : index
    %1 = vector.load %arg5[%c0_1, %c0_2] : memref<1x384xi32, #tpu.memory_space<vmem>>, vector<1x384xi32>
    %c0_i32 = arith.constant 0 : i32
    %2 = vector.broadcast %c0_i32 : i32 to vector<1x384xi32>
    %3 = arith.cmpi eq, %0, %2 : vector<1x384xi32>
    %4 = vector.shape_cast %3 : vector<1x384xi1> to vector<1x384xi1>
    %5 = vector.broadcast %4 : vector<1x384xi1> to vector<4x384xi1>
    %c17_i32 = arith.constant 17 : i32
    %6 = vector.broadcast %c17_i32 : i32 to vector<1x384xi32>
    %7 = arith.cmpi eq, %0, %6 : vector<1x384xi32>
    %8 = vector.shape_cast %7 : vector<1x384xi1> to vector<1x384xi1>
    %9 = vector.broadcast %8 : vector<1x384xi1> to vector<4x384xi1>
    %c0_i32_3 = arith.constant 0 : i32
    %10 = vector.broadcast %c0_i32_3 : i32 to vector<1x384xi32>
    %11 = arith.cmpi eq, %1, %10 : vector<1x384xi32>
    %12 = vector.shape_cast %11 : vector<1x384xi1> to vector<1x384xi1>
    %13 = vector.broadcast %12 : vector<1x384xi1> to vector<4x384xi1>
    %c17_i32_4 = arith.constant 17 : i32
    %14 = vector.broadcast %c17_i32_4 : i32 to vector<1x384xi32>
    %15 = arith.cmpi eq, %1, %14 : vector<1x384xi32>
    %16 = vector.shape_cast %15 : vector<1x384xi1> to vector<1x384xi1>
    %17 = vector.broadcast %16 : vector<1x384xi1> to vector<4x384xi1>
    %c1_i32 = arith.constant 1 : i32
    %18 = vector.broadcast %c1_i32 : i32 to vector<1x384xi32>
    %19 = arith.cmpi sge, %0, %18 : vector<1x384xi32>
    %c16_i32 = arith.constant 16 : i32
    %20 = vector.broadcast %c16_i32 : i32 to vector<1x384xi32>
    %21 = arith.cmpi sle, %0, %20 : vector<1x384xi32>
    %22 = arith.andi %19, %21 : vector<1x384xi1>
    %c1_i32_5 = arith.constant 1 : i32
    %23 = vector.broadcast %c1_i32_5 : i32 to vector<1x384xi32>
    %24 = arith.cmpi sge, %1, %23 : vector<1x384xi32>
    %25 = arith.andi %22, %24 : vector<1x384xi1>
    %c16_i32_6 = arith.constant 16 : i32
    %26 = vector.broadcast %c16_i32_6 : i32 to vector<1x384xi32>
    %27 = arith.cmpi sle, %1, %26 : vector<1x384xi32>
    %28 = arith.andi %25, %27 : vector<1x384xi1>
    %29 = vector.shape_cast %28 : vector<1x384xi1> to vector<1x384xi1>
    %30 = vector.broadcast %29 : vector<1x384xi1> to vector<4x384xi1>
    %cst = arith.constant 0.000000e+00 : bf16
    %31 = vector.broadcast %cst : bf16 to vector<4x36xbf16>
    %c0_7 = arith.constant 0 : index
    %c0_8 = arith.constant 0 : index
    %32 = vector.load %arg15[%c0_7, %c0_8] : memref<4x512xbf16, #tpu.memory_space<vmem>>, vector<4x36xbf16>
    tpu.vector_store %arg15[%c0_7, %c0_8], %31 {strides = array<i32>} : memref<4x512xbf16, #tpu.memory_space<vmem>>, vector<4x36xbf16>,
    %cst_9 = arith.constant 0.000000e+00 : bf16
    %33 = vector.broadcast %cst_9 : bf16 to vector<4x92xbf16>
    %c0_10 = arith.constant 0 : index
    %c420 = arith.constant 420 : index
    %34 = vector.load %arg15[%c0_10, %c420] : memref<4x512xbf16, #tpu.memory_space<vmem>>, vector<4x92xbf16>
    tpu.vector_store %arg15[%c0_10, %c420], %33 {strides = array<i32>} : memref<4x512xbf16, #tpu.memory_space<vmem>>, vector<4x92xbf16>,
    %c0_11 = arith.constant 0 : index
    %c0_12 = arith.constant 0 : index
    %c0_13 = arith.constant 0 : index
    %35 = vector.load %arg1[%c0_11, %c0_12, %c0_13] : memref<1x4x384xf32, #tpu.memory_space<vmem>>, vector<1x4x384xf32>
    %36 = vector.shape_cast %35 : vector<1x4x384xf32> to vector<4x384xf32>
    %37 = arith.truncf %36 : vector<4x384xf32> to vector<4x384xbf16>
    %c0_14 = arith.constant 0 : index
    %c36 = arith.constant 36 : index
    %38 = vector.load %arg15[%c0_14, %c36] : memref<4x512xbf16, #tpu.memory_space<vmem>>, vector<4x384xbf16>
    tpu.vector_store %arg15[%c0_14, %c36], %37 {strides = array<i32>} : memref<4x512xbf16, #tpu.memory_space<vmem>>, vector<4x384xbf16>,
    %c0_15 = arith.constant 0 : index
    %c38 = arith.constant 38 : index
    %39 = vector.load %arg15[%c0_15, %c38] : memref<4x512xbf16, #tpu.memory_space<vmem>>, vector<4x384xbf16>
    %40 = arith.extf %39 : vector<4x384xbf16> to vector<4x384xf32>
    %41 = arith.select %5, %40, %36 : vector<4x384xi1>, vector<4x384xf32>
    %c0_16 = arith.constant 0 : index
    %c34 = arith.constant 34 : index
    %42 = vector.load %arg15[%c0_16, %c34] : memref<4x512xbf16, #tpu.memory_space<vmem>>, vector<4x384xbf16>
    %43 = arith.extf %42 : vector<4x384xbf16> to vector<4x384xf32>
    %44 = arith.select %9, %43, %41 : vector<4x384xi1>, vector<4x384xf32>
    %45 = arith.truncf %44 : vector<4x384xf32> to vector<4x384xbf16>
    %c0_17 = arith.constant 0 : index
    %c36_18 = arith.constant 36 : index
    %46 = vector.load %arg15[%c0_17, %c36_18] : memref<4x512xbf16, #tpu.memory_space<vmem>>, vector<4x384xbf16>
    tpu.vector_store %arg15[%c0_17, %c36_18], %45 {strides = array<i32>} : memref<4x512xbf16, #tpu.memory_space<vmem>>, vector<4x384xbf16>,
    %c0_19 = arith.constant 0 : index
    %c72 = arith.constant 72 : index
    %47 = vector.load %arg15[%c0_19, %c72] : memref<4x512xbf16, #tpu.memory_space<vmem>>, vector<4x384xbf16>
    %48 = arith.extf %47 : vector<4x384xbf16> to vector<4x384xf32>
    %49 = arith.select %13, %48, %44 : vector<4x384xi1>, vector<4x384xf32>
    %c0_20 = arith.constant 0 : index
    %c0_21 = arith.constant 0 : index
    %50 = vector.load %arg15[%c0_20, %c0_21] : memref<4x512xbf16, #tpu.memory_space<vmem>>, vector<4x384xbf16>
    %51 = arith.extf %50 : vector<4x384xbf16> to vector<4x384xf32>
    %52 = arith.select %17, %51, %49 : vector<4x384xi1>, vector<4x384xf32>
    %53 = arith.truncf %52 : vector<4x384xf32> to vector<4x384xbf16>
    %c0_22 = arith.constant 0 : index
    %c36_23 = arith.constant 36 : index
    %54 = vector.load %arg15[%c0_22, %c36_23] : memref<4x512xbf16, #tpu.memory_space<vmem>>, vector<4x384xbf16>
    tpu.vector_store %arg15[%c0_22, %c36_23], %53 {strides = array<i32>} : memref<4x512xbf16, #tpu.memory_space<vmem>>, vector<4x384xbf16>,
    %cst_24 = arith.constant 0.000000e+00 : f32
    %55 = vector.broadcast %cst_24 : f32 to vector<4x384xf32>
    %c0_25 = arith.constant 0 : index
    %c0_26 = arith.constant 0 : index
    %c0_27 = arith.constant 0 : index
    %56 = vector.load %arg6[%c0_25, %c0_26, %c0_27] : memref<9x4x4xbf16, #tpu.memory_space<vmem>>, vector<1x4x4xbf16>
    %57 = vector.shape_cast %56 : vector<1x4x4xbf16> to vector<4x4xbf16>
    %c0_28 = arith.constant 0 : index
    %c17 = arith.constant 17 : index
    %58 = vector.load %arg15[%c0_28, %c17] : memref<4x512xbf16, #tpu.memory_space<vmem>>, vector<4x384xbf16>
    %cst_29 = arith.constant dense<0.000000e+00> : vector<4x384xf32>
    %59 = tpu.matmul %57, %58, %cst_29 {dimension_numbers = #tpu.dot_dimension_numbers<[1], [0], [0], [1], [0, 0, 1, 1], [], []>} : vector<4x4xbf16>, vector<4x384xbf16>, vector<4x384xf32> -> vector<4x384xf32>
    %60 = arith.addf %55, %59 : vector<4x384xf32>
    %c1 = arith.constant 1 : index
    %c0_30 = arith.constant 0 : index
    %c0_31 = arith.constant 0 : index
    %61 = vector.load %arg6[%c1, %c0_30, %c0_31] : memref<9x4x4xbf16, #tpu.memory_space<vmem>>, vector<1x4x4xbf16>
    %62 = vector.shape_cast %61 : vector<1x4x4xbf16> to vector<4x4xbf16>
    %c0_32 = arith.constant 0 : index
    %c18 = arith.constant 18 : index
    %63 = vector.load %arg15[%c0_32, %c18] : memref<4x512xbf16, #tpu.memory_space<vmem>>, vector<4x384xbf16>
    %cst_33 = arith.constant dense<0.000000e+00> : vector<4x384xf32>
    %64 = tpu.matmul %62, %63, %cst_33 {dimension_numbers = #tpu.dot_dimension_numbers<[1], [0], [0], [1], [0, 0, 1, 1], [], []>} : vector<4x4xbf16>, vector<4x384xbf16>, vector<4x384xf32> -> vector<4x384xf32>
    %65 = arith.addf %60, %64 : vector<4x384xf32>
    %c2 = arith.constant 2 : index
    %c0_34 = arith.constant 0 : index
    %c0_35 = arith.constant 0 : index
    %66 = vector.load %arg6[%c2, %c0_34, %c0_35] : memref<9x4x4xbf16, #tpu.memory_space<vmem>>, vector<1x4x4xbf16>
    %67 = vector.shape_cast %66 : vector<1x4x4xbf16> to vector<4x4xbf16>
    %c0_36 = arith.constant 0 : index
    %c19 = arith.constant 19 : index
    %68 = vector.load %arg15[%c0_36, %c19] : memref<4x512xbf16, #tpu.memory_space<vmem>>, vector<4x384xbf16>
    %cst_37 = arith.constant dense<0.000000e+00> : vector<4x384xf32>
    %69 = tpu.matmul %67, %68, %cst_37 {dimension_numbers = #tpu.dot_dimension_numbers<[1], [0], [0], [1], [0, 0, 1, 1], [], []>} : vector<4x4xbf16>, vector<4x384xbf16>, vector<4x384xf32> -> vector<4x384xf32>
    %70 = arith.addf %65, %69 : vector<4x384xf32>
    %c3 = arith.constant 3 : index
    %c0_38 = arith.constant 0 : index
    %c0_39 = arith.constant 0 : index
    %71 = vector.load %arg6[%c3, %c0_38, %c0_39] : memref<9x4x4xbf16, #tpu.memory_space<vmem>>, vector<1x4x4xbf16>
    %72 = vector.shape_cast %71 : vector<1x4x4xbf16> to vector<4x4xbf16>
    %c0_40 = arith.constant 0 : index
    %c35 = arith.constant 35 : index
    %73 = vector.load %arg15[%c0_40, %c35] : memref<4x512xbf16, #tpu.memory_space<vmem>>, vector<4x384xbf16>
    %cst_41 = arith.constant dense<0.000000e+00> : vector<4x384xf32>
    %74 = tpu.matmul %72, %73, %cst_41 {dimension_numbers = #tpu.dot_dimension_numbers<[1], [0], [0], [1], [0, 0, 1, 1], [], []>} : vector<4x4xbf16>, vector<4x384xbf16>, vector<4x384xf32> -> vector<4x384xf32>
    %75 = arith.addf %70, %74 : vector<4x384xf32>
    %c4 = arith.constant 4 : index
    %c0_42 = arith.constant 0 : index
    %c0_43 = arith.constant 0 : index
    %76 = vector.load %arg6[%c4, %c0_42, %c0_43] : memref<9x4x4xbf16, #tpu.memory_space<vmem>>, vector<1x4x4xbf16>
    %77 = vector.shape_cast %76 : vector<1x4x4xbf16> to vector<4x4xbf16>
    %c0_44 = arith.constant 0 : index
    %c36_45 = arith.constant 36 : index
    %78 = vector.load %arg15[%c0_44, %c36_45] : memref<4x512xbf16, #tpu.memory_space<vmem>>, vector<4x384xbf16>
    %cst_46 = arith.constant dense<0.000000e+00> : vector<4x384xf32>
    %79 = tpu.matmul %77, %78, %cst_46 {dimension_numbers = #tpu.dot_dimension_numbers<[1], [0], [0], [1], [0, 0, 1, 1], [], []>} : vector<4x4xbf16>, vector<4x384xbf16>, vector<4x384xf32> -> vector<4x384xf32>
    %80 = arith.addf %75, %79 : vector<4x384xf32>
    %c5 = arith.constant 5 : index
    %c0_47 = arith.constant 0 : index
    %c0_48 = arith.constant 0 : index
    %81 = vector.load %arg6[%c5, %c0_47, %c0_48] : memref<9x4x4xbf16, #tpu.memory_space<vmem>>, vector<1x4x4xbf16>
    %82 = vector.shape_cast %81 : vector<1x4x4xbf16> to vector<4x4xbf16>
    %c0_49 = arith.constant 0 : index
    %c37 = arith.constant 37 : index
    %83 = vector.load %arg15[%c0_49, %c37] : memref<4x512xbf16, #tpu.memory_space<vmem>>, vector<4x384xbf16>
    %cst_50 = arith.constant dense<0.000000e+00> : vector<4x384xf32>
    %84 = tpu.matmul %82, %83, %cst_50 {dimension_numbers = #tpu.dot_dimension_numbers<[1], [0], [0], [1], [0, 0, 1, 1], [], []>} : vector<4x4xbf16>, vector<4x384xbf16>, vector<4x384xf32> -> vector<4x384xf32>
    %85 = arith.addf %80, %84 : vector<4x384xf32>
    %c6 = arith.constant 6 : index
    %c0_51 = arith.constant 0 : index
    %c0_52 = arith.constant 0 : index
    %86 = vector.load %arg6[%c6, %c0_51, %c0_52] : memref<9x4x4xbf16, #tpu.memory_space<vmem>>, vector<1x4x4xbf16>
    %87 = vector.shape_cast %86 : vector<1x4x4xbf16> to vector<4x4xbf16>
    %c0_53 = arith.constant 0 : index
    %c53 = arith.constant 53 : index
    %88 = vector.load %arg15[%c0_53, %c53] : memref<4x512xbf16, #tpu.memory_space<vmem>>, vector<4x384xbf16>
    %cst_54 = arith.constant dense<0.000000e+00> : vector<4x384xf32>
    %89 = tpu.matmul %87, %88, %cst_54 {dimension_numbers = #tpu.dot_dimension_numbers<[1], [0], [0], [1], [0, 0, 1, 1], [], []>} : vector<4x4xbf16>, vector<4x384xbf16>, vector<4x384xf32> -> vector<4x384xf32>
    %90 = arith.addf %85, %89 : vector<4x384xf32>
    %c7 = arith.constant 7 : index
    %c0_55 = arith.constant 0 : index
    %c0_56 = arith.constant 0 : index
    %91 = vector.load %arg6[%c7, %c0_55, %c0_56] : memref<9x4x4xbf16, #tpu.memory_space<vmem>>, vector<1x4x4xbf16>
    %92 = vector.shape_cast %91 : vector<1x4x4xbf16> to vector<4x4xbf16>
    %c0_57 = arith.constant 0 : index
    %c54 = arith.constant 54 : index
    %93 = vector.load %arg15[%c0_57, %c54] : memref<4x512xbf16, #tpu.memory_space<vmem>>, vector<4x384xbf16>
    %cst_58 = arith.constant dense<0.000000e+00> : vector<4x384xf32>
    %94 = tpu.matmul %92, %93, %cst_58 {dimension_numbers = #tpu.dot_dimension_numbers<[1], [0], [0], [1], [0, 0, 1, 1], [], []>} : vector<4x4xbf16>, vector<4x384xbf16>, vector<4x384xf32> -> vector<4x384xf32>
    %95 = arith.addf %90, %94 : vector<4x384xf32>
    %c8 = arith.constant 8 : index
    %c0_59 = arith.constant 0 : index
    %c0_60 = arith.constant 0 : index
    %96 = vector.load %arg6[%c8, %c0_59, %c0_60] : memref<9x4x4xbf16, #tpu.memory_space<vmem>>, vector<1x4x4xbf16>
    %97 = vector.shape_cast %96 : vector<1x4x4xbf16> to vector<4x4xbf16>
    %c0_61 = arith.constant 0 : index
    %c55 = arith.constant 55 : index
    %98 = vector.load %arg15[%c0_61, %c55] : memref<4x512xbf16, #tpu.memory_space<vmem>>, vector<4x384xbf16>
    %cst_62 = arith.constant dense<0.000000e+00> : vector<4x384xf32>
    %99 = tpu.matmul %97, %98, %cst_62 {dimension_numbers = #tpu.dot_dimension_numbers<[1], [0], [0], [1], [0, 0, 1, 1], [], []>} : vector<4x4xbf16>, vector<4x384xbf16>, vector<4x384xf32> -> vector<4x384xf32>
    %100 = arith.addf %95, %99 : vector<4x384xf32>
    %cst_63 = arith.constant 0.000000e+00 : f32
    %101 = vector.broadcast %cst_63 : f32 to vector<4x384xf32>
    %102 = arith.select %30, %100, %101 : vector<4x384xi1>, vector<4x384xf32>
    %cst_64 = arith.constant dense<0.000000e+00> : vector<4xf32>
    %103 = vector.multi_reduction <add>, %102, %cst_64 [1] : vector<4x384xf32> to vector<4xf32>
    %104 = vector.shape_cast %103 : vector<4xf32> to vector<4x1xf32>
    %105 = arith.mulf %100, %100 : vector<4x384xf32>
    %cst_65 = arith.constant 0.000000e+00 : f32
    %106 = vector.broadcast %cst_65 : f32 to vector<4x384xf32>
    %107 = arith.select %30, %105, %106 : vector<4x384xi1>, vector<4x384xf32>
    %cst_66 = arith.constant dense<0.000000e+00> : vector<4xf32>
    %108 = vector.multi_reduction <add>, %107, %cst_66 [1] : vector<4x384xf32> to vector<4xf32>
    %109 = vector.shape_cast %108 : vector<4xf32> to vector<4x1xf32>
    %cst_67 = arith.constant 3.906250e-03 : f32
    %110 = vector.broadcast %cst_67 : f32 to vector<4x1xf32>
    %111 = arith.mulf %104, %110 : vector<4x1xf32>
    %cst_68 = arith.constant 3.906250e-03 : f32
    %112 = vector.broadcast %cst_68 : f32 to vector<4x1xf32>
    %113 = arith.mulf %109, %112 : vector<4x1xf32>
    %114 = arith.mulf %111, %111 : vector<4x1xf32>
    %115 = arith.subf %113, %114 : vector<4x1xf32>
    %cst_69 = arith.constant 0.000000e+00 : f32
    %116 = vector.broadcast %cst_69 : f32 to vector<4x1xf32>
    %117 = arith.maximumf %115, %116 : vector<4x1xf32>
    %118 = vector.broadcast %111 : vector<4x1xf32> to vector<4x384xf32>
    %119 = arith.subf %100, %118 : vector<4x384xf32>
    %cst_70 = arith.constant 9.99999974E-6 : f32
    %120 = vector.broadcast %cst_70 : f32 to vector<4x1xf32>
    %121 = arith.addf %117, %120 : vector<4x1xf32>
    %122 = math.rsqrt %121 : vector<4x1xf32>
    %123 = vector.broadcast %122 : vector<4x1xf32> to vector<4x384xf32>
    %124 = arith.mulf %119, %123 : vector<4x384xf32>
    %c0_71 = arith.constant 0 : index
    %c0_72 = arith.constant 0 : index
    %125 = vector.load %arg7[%c0_71, %c0_72] : memref<8x4xbf16, #tpu.memory_space<vmem>>, vector<8x4xbf16>
    %126 = arith.truncf %124 : vector<4x384xf32> to vector<4x384xbf16>
    %cst_73 = arith.constant dense<0.000000e+00> : vector<8x384xf32>
    %127 = tpu.matmul %125, %126, %cst_73 {dimension_numbers = #tpu.dot_dimension_numbers<[1], [0], [0], [1], [0, 0, 1, 1], [], []>} : vector<8x4xbf16>, vector<4x384xbf16>, vector<8x384xf32> -> vector<8x384xf32>
    %c0_74 = arith.constant 0 : index
    %c0_75 = arith.constant 0 : index
    %c0_76 = arith.constant 0 : index
    %128 = vector.load %arg2[%c0_74, %c0_75, %c0_76] : memref<1x8x1xf32, #tpu.memory_space<vmem>>, vector<1x8x1xf32>
    %129 = vector.shape_cast %128 : vector<1x8x1xf32> to vector<8x1xf32>
    %130 = vector.broadcast %129 : vector<8x1xf32> to vector<8x384xf32>
    %131 = arith.addf %127, %130 : vector<8x384xf32>
    %cst_77 = arith.constant 0.000000e+00 : f32
    %132 = vector.broadcast %cst_77 : f32 to vector<8x384xf32>
    %133 = arith.maximumf %131, %132 : vector<8x384xf32>
    %c0_78 = arith.constant 0 : index
    %c0_79 = arith.constant 0 : index
    %134 = vector.load %arg8[%c0_78, %c0_79] : memref<4x8xbf16, #tpu.memory_space<vmem>>, vector<4x8xbf16>
    %135 = arith.truncf %133 : vector<8x384xf32> to vector<8x384xbf16>
    %cst_80 = arith.constant dense<0.000000e+00> : vector<4x384xf32>
    %136 = tpu.matmul %134, %135, %cst_80 {dimension_numbers = #tpu.dot_dimension_numbers<[1], [0], [0], [1], [0, 0, 1, 1], [], []>} : vector<4x8xbf16>, vector<8x384xbf16>, vector<4x384xf32> -> vector<4x384xf32>
    %c0_81 = arith.constant 0 : index
    %c0_82 = arith.constant 0 : index
    %137 = vector.load %arg9[%c0_81, %c0_82] : memref<4x1xf32, #tpu.memory_space<vmem>>, vector<4x1xf32>
    %138 = vector.broadcast %137 : vector<4x1xf32> to vector<4x384xf32>
    %139 = arith.addf %136, %138 : vector<4x384xf32>
    %cst_83 = arith.constant 0.000000e+00 : f32
    %140 = vector.broadcast %cst_83 : f32 to vector<4x384xf32>
    %141 = arith.maximumf %139, %140 : vector<4x384xf32>
    %142 = arith.truncf %141 : vector<4x384xf32> to vector<4x384xbf16>
    %c0_84 = arith.constant 0 : index
    %c36_85 = arith.constant 36 : index
    %143 = vector.load %arg15[%c0_84, %c36_85] : memref<4x512xbf16, #tpu.memory_space<vmem>>, vector<4x384xbf16>
    tpu.vector_store %arg15[%c0_84, %c36_85], %142 {strides = array<i32>} : memref<4x512xbf16, #tpu.memory_space<vmem>>, vector<4x384xbf16>,
    %c0_86 = arith.constant 0 : index
    %c38_87 = arith.constant 38 : index
    %144 = vector.load %arg15[%c0_86, %c38_87] : memref<4x512xbf16, #tpu.memory_space<vmem>>, vector<4x384xbf16>
    %145 = arith.extf %144 : vector<4x384xbf16> to vector<4x384xf32>
    %146 = arith.select %5, %145, %141 : vector<4x384xi1>, vector<4x384xf32>
    %c0_88 = arith.constant 0 : index
    %c34_89 = arith.constant 34 : index
    %147 = vector.load %arg15[%c0_88, %c34_89] : memref<4x512xbf16, #tpu.memory_space<vmem>>, vector<4x384xbf16>
    %148 = arith.extf %147 : vector<4x384xbf16> to vector<4x384xf32>
    %149 = arith.select %9, %148, %146 : vector<4x384xi1>, vector<4x384xf32>
    %150 = arith.truncf %149 : vector<4x384xf32> to vector<4x384xbf16>
    %c0_90 = arith.constant 0 : index
    %c36_91 = arith.constant 36 : index
    %151 = vector.load %arg15[%c0_90, %c36_91] : memref<4x512xbf16, #tpu.memory_space<vmem>>, vector<4x384xbf16>
    tpu.vector_store %arg15[%c0_90, %c36_91], %150 {strides = array<i32>} : memref<4x512xbf16, #tpu.memory_space<vmem>>, vector<4x384xbf16>,
    %c0_92 = arith.constant 0 : index
    %c72_93 = arith.constant 72 : index
    %152 = vector.load %arg15[%c0_92, %c72_93] : memref<4x512xbf16, #tpu.memory_space<vmem>>, vector<4x384xbf16>
    %153 = arith.extf %152 : vector<4x384xbf16> to vector<4x384xf32>
    %154 = arith.select %13, %153, %149 : vector<4x384xi1>, vector<4x384xf32>
    %c0_94 = arith.constant 0 : index
    %c0_95 = arith.constant 0 : index
    %155 = vector.load %arg15[%c0_94, %c0_95] : memref<4x512xbf16, #tpu.memory_space<vmem>>, vector<4x384xbf16>
    %156 = arith.extf %155 : vector<4x384xbf16> to vector<4x384xf32>
    %157 = arith.select %17, %156, %154 : vector<4x384xi1>, vector<4x384xf32>
    %158 = arith.truncf %157 : vector<4x384xf32> to vector<4x384xbf16>
    %c0_96 = arith.constant 0 : index
    %c36_97 = arith.constant 36 : index
    %159 = vector.load %arg15[%c0_96, %c36_97] : memref<4x512xbf16, #tpu.memory_space<vmem>>, vector<4x384xbf16>
    tpu.vector_store %arg15[%c0_96, %c36_97], %158 {strides = array<i32>} : memref<4x512xbf16, #tpu.memory_space<vmem>>, vector<4x384xbf16>,
    %cst_98 = arith.constant 0.000000e+00 : f32
    %160 = vector.broadcast %cst_98 : f32 to vector<4x384xf32>
    %c0_99 = arith.constant 0 : index
    %c0_100 = arith.constant 0 : index
    %c0_101 = arith.constant 0 : index
    %161 = vector.load %arg10[%c0_99, %c0_100, %c0_101] : memref<9x4x4xbf16, #tpu.memory_space<vmem>>, vector<1x4x4xbf16>
    %162 = vector.shape_cast %161 : vector<1x4x4xbf16> to vector<4x4xbf16>
    %c0_102 = arith.constant 0 : index
    %c17_103 = arith.constant 17 : index
    %163 = vector.load %arg15[%c0_102, %c17_103] : memref<4x512xbf16, #tpu.memory_space<vmem>>, vector<4x384xbf16>
    %cst_104 = arith.constant dense<0.000000e+00> : vector<4x384xf32>
    %164 = tpu.matmul %162, %163, %cst_104 {dimension_numbers = #tpu.dot_dimension_numbers<[1], [0], [0], [1], [0, 0, 1, 1], [], []>} : vector<4x4xbf16>, vector<4x384xbf16>, vector<4x384xf32> -> vector<4x384xf32>
    %165 = arith.addf %160, %164 : vector<4x384xf32>
    %c1_105 = arith.constant 1 : index
    %c0_106 = arith.constant 0 : index
    %c0_107 = arith.constant 0 : index
    %166 = vector.load %arg10[%c1_105, %c0_106, %c0_107] : memref<9x4x4xbf16, #tpu.memory_space<vmem>>, vector<1x4x4xbf16>
    %167 = vector.shape_cast %166 : vector<1x4x4xbf16> to vector<4x4xbf16>
    %c0_108 = arith.constant 0 : index
    %c18_109 = arith.constant 18 : index
    %168 = vector.load %arg15[%c0_108, %c18_109] : memref<4x512xbf16, #tpu.memory_space<vmem>>, vector<4x384xbf16>
    %cst_110 = arith.constant dense<0.000000e+00> : vector<4x384xf32>
    %169 = tpu.matmul %167, %168, %cst_110 {dimension_numbers = #tpu.dot_dimension_numbers<[1], [0], [0], [1], [0, 0, 1, 1], [], []>} : vector<4x4xbf16>, vector<4x384xbf16>, vector<4x384xf32> -> vector<4x384xf32>
    %170 = arith.addf %165, %169 : vector<4x384xf32>
    %c2_111 = arith.constant 2 : index
    %c0_112 = arith.constant 0 : index
    %c0_113 = arith.constant 0 : index
    %171 = vector.load %arg10[%c2_111, %c0_112, %c0_113] : memref<9x4x4xbf16, #tpu.memory_space<vmem>>, vector<1x4x4xbf16>
    %172 = vector.shape_cast %171 : vector<1x4x4xbf16> to vector<4x4xbf16>
    %c0_114 = arith.constant 0 : index
    %c19_115 = arith.constant 19 : index
    %173 = vector.load %arg15[%c0_114, %c19_115] : memref<4x512xbf16, #tpu.memory_space<vmem>>, vector<4x384xbf16>
    %cst_116 = arith.constant dense<0.000000e+00> : vector<4x384xf32>
    %174 = tpu.matmul %172, %173, %cst_116 {dimension_numbers = #tpu.dot_dimension_numbers<[1], [0], [0], [1], [0, 0, 1, 1], [], []>} : vector<4x4xbf16>, vector<4x384xbf16>, vector<4x384xf32> -> vector<4x384xf32>
    %175 = arith.addf %170, %174 : vector<4x384xf32>
    %c3_117 = arith.constant 3 : index
    %c0_118 = arith.constant 0 : index
    %c0_119 = arith.constant 0 : index
    %176 = vector.load %arg10[%c3_117, %c0_118, %c0_119] : memref<9x4x4xbf16, #tpu.memory_space<vmem>>, vector<1x4x4xbf16>
    %177 = vector.shape_cast %176 : vector<1x4x4xbf16> to vector<4x4xbf16>
    %c0_120 = arith.constant 0 : index
    %c35_121 = arith.constant 35 : index
    %178 = vector.load %arg15[%c0_120, %c35_121] : memref<4x512xbf16, #tpu.memory_space<vmem>>, vector<4x384xbf16>
    %cst_122 = arith.constant dense<0.000000e+00> : vector<4x384xf32>
    %179 = tpu.matmul %177, %178, %cst_122 {dimension_numbers = #tpu.dot_dimension_numbers<[1], [0], [0], [1], [0, 0, 1, 1], [], []>} : vector<4x4xbf16>, vector<4x384xbf16>, vector<4x384xf32> -> vector<4x384xf32>
    %180 = arith.addf %175, %179 : vector<4x384xf32>
    %c4_123 = arith.constant 4 : index
    %c0_124 = arith.constant 0 : index
    %c0_125 = arith.constant 0 : index
    %181 = vector.load %arg10[%c4_123, %c0_124, %c0_125] : memref<9x4x4xbf16, #tpu.memory_space<vmem>>, vector<1x4x4xbf16>
    %182 = vector.shape_cast %181 : vector<1x4x4xbf16> to vector<4x4xbf16>
    %c0_126 = arith.constant 0 : index
    %c36_127 = arith.constant 36 : index
    %183 = vector.load %arg15[%c0_126, %c36_127] : memref<4x512xbf16, #tpu.memory_space<vmem>>, vector<4x384xbf16>
    %cst_128 = arith.constant dense<0.000000e+00> : vector<4x384xf32>
    %184 = tpu.matmul %182, %183, %cst_128 {dimension_numbers = #tpu.dot_dimension_numbers<[1], [0], [0], [1], [0, 0, 1, 1], [], []>} : vector<4x4xbf16>, vector<4x384xbf16>, vector<4x384xf32> -> vector<4x384xf32>
    %185 = arith.addf %180, %184 : vector<4x384xf32>
    %c5_129 = arith.constant 5 : index
    %c0_130 = arith.constant 0 : index
    %c0_131 = arith.constant 0 : index
    %186 = vector.load %arg10[%c5_129, %c0_130, %c0_131] : memref<9x4x4xbf16, #tpu.memory_space<vmem>>, vector<1x4x4xbf16>
    %187 = vector.shape_cast %186 : vector<1x4x4xbf16> to vector<4x4xbf16>
    %c0_132 = arith.constant 0 : index
    %c37_133 = arith.constant 37 : index
    %188 = vector.load %arg15[%c0_132, %c37_133] : memref<4x512xbf16, #tpu.memory_space<vmem>>, vector<4x384xbf16>
    %cst_134 = arith.constant dense<0.000000e+00> : vector<4x384xf32>
    %189 = tpu.matmul %187, %188, %cst_134 {dimension_numbers = #tpu.dot_dimension_numbers<[1], [0], [0], [1], [0, 0, 1, 1], [], []>} : vector<4x4xbf16>, vector<4x384xbf16>, vector<4x384xf32> -> vector<4x384xf32>
    %190 = arith.addf %185, %189 : vector<4x384xf32>
    %c6_135 = arith.constant 6 : index
    %c0_136 = arith.constant 0 : index
    %c0_137 = arith.constant 0 : index
    %191 = vector.load %arg10[%c6_135, %c0_136, %c0_137] : memref<9x4x4xbf16, #tpu.memory_space<vmem>>, vector<1x4x4xbf16>
    %192 = vector.shape_cast %191 : vector<1x4x4xbf16> to vector<4x4xbf16>
    %c0_138 = arith.constant 0 : index
    %c53_139 = arith.constant 53 : index
    %193 = vector.load %arg15[%c0_138, %c53_139] : memref<4x512xbf16, #tpu.memory_space<vmem>>, vector<4x384xbf16>
    %cst_140 = arith.constant dense<0.000000e+00> : vector<4x384xf32>
    %194 = tpu.matmul %192, %193, %cst_140 {dimension_numbers = #tpu.dot_dimension_numbers<[1], [0], [0], [1], [0, 0, 1, 1], [], []>} : vector<4x4xbf16>, vector<4x384xbf16>, vector<4x384xf32> -> vector<4x384xf32>
    %195 = arith.addf %190, %194 : vector<4x384xf32>
    %c7_141 = arith.constant 7 : index
    %c0_142 = arith.constant 0 : index
    %c0_143 = arith.constant 0 : index
    %196 = vector.load %arg10[%c7_141, %c0_142, %c0_143] : memref<9x4x4xbf16, #tpu.memory_space<vmem>>, vector<1x4x4xbf16>
    %197 = vector.shape_cast %196 : vector<1x4x4xbf16> to vector<4x4xbf16>
    %c0_144 = arith.constant 0 : index
    %c54_145 = arith.constant 54 : index
    %198 = vector.load %arg15[%c0_144, %c54_145] : memref<4x512xbf16, #tpu.memory_space<vmem>>, vector<4x384xbf16>
    %cst_146 = arith.constant dense<0.000000e+00> : vector<4x384xf32>
    %199 = tpu.matmul %197, %198, %cst_146 {dimension_numbers = #tpu.dot_dimension_numbers<[1], [0], [0], [1], [0, 0, 1, 1], [], []>} : vector<4x4xbf16>, vector<4x384xbf16>, vector<4x384xf32> -> vector<4x384xf32>
    %200 = arith.addf %195, %199 : vector<4x384xf32>
    %c8_147 = arith.constant 8 : index
    %c0_148 = arith.constant 0 : index
    %c0_149 = arith.constant 0 : index
    %201 = vector.load %arg10[%c8_147, %c0_148, %c0_149] : memref<9x4x4xbf16, #tpu.memory_space<vmem>>, vector<1x4x4xbf16>
    %202 = vector.shape_cast %201 : vector<1x4x4xbf16> to vector<4x4xbf16>
    %c0_150 = arith.constant 0 : index
    %c55_151 = arith.constant 55 : index
    %203 = vector.load %arg15[%c0_150, %c55_151] : memref<4x512xbf16, #tpu.memory_space<vmem>>, vector<4x384xbf16>
    %cst_152 = arith.constant dense<0.000000e+00> : vector<4x384xf32>
    %204 = tpu.matmul %202, %203, %cst_152 {dimension_numbers = #tpu.dot_dimension_numbers<[1], [0], [0], [1], [0, 0, 1, 1], [], []>} : vector<4x4xbf16>, vector<4x384xbf16>, vector<4x384xf32> -> vector<4x384xf32>
    %205 = arith.addf %200, %204 : vector<4x384xf32>
    %cst_153 = arith.constant 0.000000e+00 : f32
    %206 = vector.broadcast %cst_153 : f32 to vector<4x384xf32>
    %207 = arith.select %30, %205, %206 : vector<4x384xi1>, vector<4x384xf32>
    %cst_154 = arith.constant dense<0.000000e+00> : vector<4xf32>
    %208 = vector.multi_reduction <add>, %207, %cst_154 [1] : vector<4x384xf32> to vector<4xf32>
    %209 = vector.shape_cast %208 : vector<4xf32> to vector<4x1xf32>
    %210 = arith.mulf %205, %205 : vector<4x384xf32>
    %cst_155 = arith.constant 0.000000e+00 : f32
    %211 = vector.broadcast %cst_155 : f32 to vector<4x384xf32>
    %212 = arith.select %30, %210, %211 : vector<4x384xi1>, vector<4x384xf32>
    %cst_156 = arith.constant dense<0.000000e+00> : vector<4xf32>
    %213 = vector.multi_reduction <add>, %212, %cst_156 [1] : vector<4x384xf32> to vector<4xf32>
    %214 = vector.shape_cast %213 : vector<4xf32> to vector<4x1xf32>
    %cst_157 = arith.constant 3.906250e-03 : f32
    %215 = vector.broadcast %cst_157 : f32 to vector<4x1xf32>
    %216 = arith.mulf %209, %215 : vector<4x1xf32>
    %cst_158 = arith.constant 3.906250e-03 : f32
    %217 = vector.broadcast %cst_158 : f32 to vector<4x1xf32>
    %218 = arith.mulf %214, %217 : vector<4x1xf32>
    %219 = arith.mulf %216, %216 : vector<4x1xf32>
    %220 = arith.subf %218, %219 : vector<4x1xf32>
    %cst_159 = arith.constant 0.000000e+00 : f32
    %221 = vector.broadcast %cst_159 : f32 to vector<4x1xf32>
    %222 = arith.maximumf %220, %221 : vector<4x1xf32>
    %223 = vector.broadcast %216 : vector<4x1xf32> to vector<4x384xf32>
    %224 = arith.subf %205, %223 : vector<4x384xf32>
    %cst_160 = arith.constant 9.99999974E-6 : f32
    %225 = vector.broadcast %cst_160 : f32 to vector<4x1xf32>
    %226 = arith.addf %222, %225 : vector<4x1xf32>
    %227 = math.rsqrt %226 : vector<4x1xf32>
    %228 = vector.broadcast %227 : vector<4x1xf32> to vector<4x384xf32>
    %229 = arith.mulf %224, %228 : vector<4x384xf32>
    %c0_161 = arith.constant 0 : index
    %c0_162 = arith.constant 0 : index
    %230 = vector.load %arg11[%c0_161, %c0_162] : memref<8x4xbf16, #tpu.memory_space<vmem>>, vector<8x4xbf16>
    %231 = arith.truncf %229 : vector<4x384xf32> to vector<4x384xbf16>
    %cst_163 = arith.constant dense<0.000000e+00> : vector<8x384xf32>
    %232 = tpu.matmul %230, %231, %cst_163 {dimension_numbers = #tpu.dot_dimension_numbers<[1], [0], [0], [1], [0, 0, 1, 1], [], []>} : vector<8x4xbf16>, vector<4x384xbf16>, vector<8x384xf32> -> vector<8x384xf32>
    %c0_164 = arith.constant 0 : index
    %c0_165 = arith.constant 0 : index
    %c0_166 = arith.constant 0 : index
    %233 = vector.load %arg3[%c0_164, %c0_165, %c0_166] : memref<1x8x1xf32, #tpu.memory_space<vmem>>, vector<1x8x1xf32>
    %234 = vector.shape_cast %233 : vector<1x8x1xf32> to vector<8x1xf32>
    %235 = vector.broadcast %234 : vector<8x1xf32> to vector<8x384xf32>
    %236 = arith.addf %232, %235 : vector<8x384xf32>
    %cst_167 = arith.constant 0.000000e+00 : f32
    %237 = vector.broadcast %cst_167 : f32 to vector<8x384xf32>
    %238 = arith.maximumf %236, %237 : vector<8x384xf32>
    %c0_168 = arith.constant 0 : index
    %c0_169 = arith.constant 0 : index
    %239 = vector.load %arg12[%c0_168, %c0_169] : memref<4x8xbf16, #tpu.memory_space<vmem>>, vector<4x8xbf16>
    %240 = arith.truncf %238 : vector<8x384xf32> to vector<8x384xbf16>
    %cst_170 = arith.constant dense<0.000000e+00> : vector<4x384xf32>
    %241 = tpu.matmul %239, %240, %cst_170 {dimension_numbers = #tpu.dot_dimension_numbers<[1], [0], [0], [1], [0, 0, 1, 1], [], []>} : vector<4x8xbf16>, vector<8x384xbf16>, vector<4x384xf32> -> vector<4x384xf32>
    %c0_171 = arith.constant 0 : index
    %c0_172 = arith.constant 0 : index
    %242 = vector.load %arg13[%c0_171, %c0_172] : memref<4x1xf32, #tpu.memory_space<vmem>>, vector<4x1xf32>
    %243 = vector.broadcast %242 : vector<4x1xf32> to vector<4x384xf32>
    %244 = arith.addf %241, %243 : vector<4x384xf32>
    %cst_173 = arith.constant 0.000000e+00 : f32
    %245 = vector.broadcast %cst_173 : f32 to vector<4x384xf32>
    %246 = arith.maximumf %244, %245 : vector<4x384xf32>
    %247 = arith.addf %246, %36 : vector<4x384xf32>
    %c0_174 = arith.constant 0 : index
    %c0_175 = arith.constant 0 : index
    %c0_176 = arith.constant 0 : index
    %248 = vector.load %arg14[%c0_174, %c0_175, %c0_176] : memref<1x4x384xf32, #tpu.memory_space<vmem>>, vector<1x4x384xf32>
    %249 = vector.shape_cast %248 : vector<1x4x384xf32> to vector<4x384xf32>
    %250 = vector.shape_cast %247 : vector<4x384xf32> to vector<1x4x384xf32>
    tpu.vector_store %arg14[%c0_174, %c0_175, %c0_176], %250 {strides = array<i32>} : memref<1x4x384xf32, #tpu.memory_space<vmem>>, vector<1x4x384xf32>,
    return
  }
  func.func @transform_0(%arg0: i32) -> (i32, i32, i32) {
    %c0_i32 = arith.constant 0 : i32
    %c0_i32_0 = arith.constant 0 : i32
    %c0_i32_1 = arith.constant 0 : i32
    return %arg0, %c0_i32, %c0_i32_0 : i32, i32, i32
  }
  func.func @transform_1(%arg0: i32) -> (i32, i32, i32) {
    %c0_i32 = arith.constant 0 : i32
    %c0_i32_0 = arith.constant 0 : i32
    %c0_i32_1 = arith.constant 0 : i32
    return %arg0, %c0_i32, %c0_i32_0 : i32, i32, i32
  }
  func.func @transform_2(%arg0: i32) -> (i32, i32, i32) {
    %c0_i32 = arith.constant 0 : i32
    %c0_i32_0 = arith.constant 0 : i32
    %c0_i32_1 = arith.constant 0 : i32
    return %arg0, %c0_i32, %c0_i32_0 : i32, i32, i32
  }
  func.func @transform_3(%arg0: i32) -> (i32, i32) {
    %c0_i32 = arith.constant 0 : i32
    %c0_i32_0 = arith.constant 0 : i32
    %c0_i32_1 = arith.constant 0 : i32
    return %c0_i32, %c0_i32_0 : i32, i32
  }
  func.func @transform_4(%arg0: i32) -> (i32, i32) {
    %c0_i32 = arith.constant 0 : i32
    %c0_i32_0 = arith.constant 0 : i32
    %c0_i32_1 = arith.constant 0 : i32
    return %c0_i32, %c0_i32_0 : i32, i32
  }
  func.func @transform_5(%arg0: i32) -> (i32, i32, i32) {
    %c0_i32 = arith.constant 0 : i32
    %c0_i32_0 = arith.constant 0 : i32
    %c0_i32_1 = arith.constant 0 : i32
    %c0_i32_2 = arith.constant 0 : i32
    return %c0_i32, %c0_i32_0, %c0_i32_1 : i32, i32, i32
  }
  func.func @transform_6(%arg0: i32) -> (i32, i32) {
    %c0_i32 = arith.constant 0 : i32
    %c0_i32_0 = arith.constant 0 : i32
    %c0_i32_1 = arith.constant 0 : i32
    return %c0_i32, %c0_i32_0 : i32, i32
  }
  func.func @transform_7(%arg0: i32) -> (i32, i32) {
    %c0_i32 = arith.constant 0 : i32
    %c0_i32_0 = arith.constant 0 : i32
    %c0_i32_1 = arith.constant 0 : i32
    return %c0_i32, %c0_i32_0 : i32, i32
  }
  func.func @transform_8(%arg0: i32) -> (i32, i32) {
    %c0_i32 = arith.constant 0 : i32
    %c0_i32_0 = arith.constant 0 : i32
    %c0_i32_1 = arith.constant 0 : i32
    return %c0_i32, %c0_i32_0 : i32, i32
  }
  func.func @transform_9(%arg0: i32) -> (i32, i32, i32) {
    %c0_i32 = arith.constant 0 : i32
    %c0_i32_0 = arith.constant 0 : i32
    %c0_i32_1 = arith.constant 0 : i32
    %c0_i32_2 = arith.constant 0 : i32
    return %c0_i32, %c0_i32_0, %c0_i32_1 : i32, i32, i32
  }
  func.func @transform_10(%arg0: i32) -> (i32, i32) {
    %c0_i32 = arith.constant 0 : i32
    %c0_i32_0 = arith.constant 0 : i32
    %c0_i32_1 = arith.constant 0 : i32
    return %c0_i32, %c0_i32_0 : i32, i32
  }
  func.func @transform_11(%arg0: i32) -> (i32, i32) {
    %c0_i32 = arith.constant 0 : i32
    %c0_i32_0 = arith.constant 0 : i32
    %c0_i32_1 = arith.constant 0 : i32
    return %c0_i32, %c0_i32_0 : i32, i32
  }
  func.func @transform_12(%arg0: i32) -> (i32, i32) {
    %c0_i32 = arith.constant 0 : i32
    %c0_i32_0 = arith.constant 0 : i32
    %c0_i32_1 = arith.constant 0 : i32
    return %c0_i32, %c0_i32_0 : i32, i32
  }
  func.func @transform_13(%arg0: i32) -> (i32, i32, i32) {
    %c0_i32 = arith.constant 0 : i32
    %c0_i32_0 = arith.constant 0 : i32
    %c0_i32_1 = arith.constant 0 : i32
    return %arg0, %c0_i32, %c0_i32_0 : i32, i32, i32
  }
}

</mosaic_0001>

<bundles_post_ra>
// kernel: mis_ins_res_block.1
= control target key start
LH: loop header
LB: loop body
LE: loop exit
PB: predicated region body
PF: predicated region fallthrough
CT: control target
= control target key end

     0   :  { %s3011_s25 = smov 0   ;;  %s3683_s0 = inlined_call_operand.vmem [shape: f32[2,4,384], index: 0, kind: input, shape index: {}]   ;;  %s3684_s1 = inlined_call_operand.vmem [shape: f32[2,8,1], index: 1, kind: input, shape index: {}]   ;;  %s3685_s2 = inlined_call_operand.vmem [shape: f32[2,8,1], index: 2, kind: input, shape index: {}]   ;;  %s3686_s3 = inlined_call_operand.vmem [shape: s32[1,384], index: 3, kind: input, shape index: {}]   ;;  %s3687_s4 = inlined_call_operand.vmem [shape: s32[1,384], index: 4, kind: input, shape index: {}]   ;;  %s3688_s5 = inlined_call_operand.vmem [shape: bf16[9,4,4], index: 5, kind: input, shape index: {}]   ;;  %s3689_s6 = inlined_call_operand.vmem [shape: bf16[8,4], index: 6, kind: input, shape index: {}]   ;;  %s3690_s7 = inlined_call_operand.vmem [shape: bf16[4,8], index: 7, kind: input, shape index: {}]   ;;  %s3691_s8 = inlined_call_operand.vmem [shape: f32[4,1], index: 8, kind: input, shape index: {}]   ;;  %s3692_s9 = inlined_call_operand.vmem [shape: bf16[9,4,4], index: 9, kind: input, shape index: {}]   ;;  %s3693_s10 = inlined_call_operand.vmem [shape: bf16[8,4], index: 10, kind: input, shape index: {}]   ;;  %s3694_s11 = inlined_call_operand.vmem [shape: bf16[4,8], index: 11, kind: input, shape index: {}]   ;;  %s3695_s12 = inlined_call_operand.vmem [shape: f32[4,1], index: 12, kind: input, shape index: {}]   ;;  %s3696_s13 = inlined_call_operand.vmem [shape: f32[2,4,384], index: 13, kind: output, shape index: {}]  }
   0x1 LB: > { %s2737_s26 = sadd.s32 4294967295, %s2925_s25   ;;  %p2741_p0 = scmp.ge.s32.totalorder %s2925_s25, 1  ;;  %s2925_s25 = sphi %s3011_s25, %s23_s25  }
   0x2   : > { %p405_p1 = scmp.lt.s32.totalorder %s2925_s25, 3 }
   0x4   : > { %p406_p2 = pnand %p2741_p0, %p405_p1 }
   0x5   : > { %p457_p3 = scmp.lt.s32.totalorder (!%p406_p2), %s2737_s26, 1  ;;  %s2928_s14 = smov (!%p406_p2), 36  }
   0x6   : > { %409 = sbr.rel (%p406_p2) target bundleno = 2876 (0xb3c), region = 72  ;;  %s2929_s15 = smov (!%p406_p2), 90  }
   0x7   : > { %s2930_s16 = smov (!%p406_p2), 94   ;;  %s2931_s19 = smov (!%p406_p2), 56  }
   0x8   : > { %s2932_s22 = smov (!%p406_p2), 110   ;;  %s2933_s23 = smov (!%p406_p2), 111  }
   0x9   : > { %s2934_s24 = smov (!%p406_p2), 109   ;;  %s2935_s28 = smov (!%p406_p2), 93  }
   0xa   : > { %s2936_s29 = smov (!%p406_p2), 92   ;;  %s3724_s17 = smov (!%p406_p2), 75  }
   0xb   : > { %vm524_vm0 = vcmask 287744   ;;  %v2927_v0 = vmov 0   ;;  %s3897_s26 = smov (!%p457_p3, %s2737_s26), 1  ;;  %vm526_vm1 = vcmask 1041696   ;;  %vm3720_vm2 = vcmask 1041408   ;;  %s3708_s18 = smov 74  }
   0xc   : > { %2883 = vset.pattern.permute.xlu2 %v2927_v0  ;;  %2914 = vset.pattern.permute.xlu0 %v2927_v0  ;;  %525 = vst.msk [vmem:[#allocation2] sm:$0x3] %vm524_vm0, %v2927_v0  ;;  %s3703_s27 = smul.u32 12, %s3897_s26  ;;  %vm3704_vm3 = vcmask 1045508   ;;  %vm3700_vm4 = vcmask 1043456   ;;  %vm565_vm5 = vcmask 1043458  }
   0xd   : > { %527 = vst.msk [vmem:[#allocation2 + $0x6] sm:$0x3] %vm526_vm1, %v2927_v0  ;;  %vm566_vm6 = vmor %vm565_vm5, %vm526_vm1  ;;  %vm568_vm8 = vcmask 293894   ;;  %vm3699_vm9 = vcmask 293888   ;;  %v3060_v36 = vld [vmem:[%s3686_s3] sm:$0x7] }
   0xe   : > { %s461_s30 = scalar_lea.vmem %s3683_s0, %s3703_s27  ;;  %vm567_vm7 = vmor %vm3704_vm3, %vm566_vm6  ;;  %vm478_vm11 = vcmp.eq.s32.totalorder %v3060_v36, 0  ;;  %vm486_vm12 = vcmp.eq.s32.totalorder %v3060_v36, 17  ;;  %vm3698_vm13 = vcmask 736256   ;;  %vm3697_vm15 = vcmask 769024   ;;  %s3706_s20 = smov 73  }
   0xf   : > { %v3032_v1 = vld [vmem:[%s461_s30] sm:$0xff]  ;;  %v3034_v2 = vld [vmem:[%s461_s30 + $0x8] sm:$0xf]  ;;  %vm3044_vm10 = vmor %vm568_vm8, %vm567_vm7  ;;  %v479_v37 = vsel %vm478_vm11, 1, %v2927_v0  ;;  %v487_v40 = vsel %vm486_vm12, 1, %v2927_v0  ;;  %vm3701_vm12 = vcmask 457728  }
  0x10   : > { %532 = vst [vmem:[#allocation1] ss:$2 sm:$0xff] %v3032_v1  ;;  %v482_v39 = vperm.slane %v479_v37, 2  ;;  %v490_v44 = vperm.slane %v487_v40, 2  ;;  %v480_v52 = vperm.slane %v479_v37, 0  ;;  %v481_v53 = vperm.slane %v479_v37, 1 }
  0x11   : > { %534 = vst [vmem:[#allocation1 + $0x10] ss:$2 sm:$0xff] %v3034_v2  ;;  %v488_v56 = vperm.slane %v487_v40, 0  ;;  %v489_v58 = vperm.slane %v487_v40, 1  ;;  %s3726_s30 = smov 91  }
  0x12   : > { %vm3066_vm14 = vcmp.eq.s32.totalorder %v482_v39, 1  ;;  %vm3071_vm0 = vcmp.eq.s32.totalorder %v490_v44, 1  ;;  %vm3082_vm1 = vcmp.eq.s32.totalorder %v480_v52, 1  ;;  %vm3086_vm5 = vcmp.eq.s32.totalorder %v481_v53, 1  ;;  %v3130_v39 = vld [vmem:[%s3687_s4] sm:$0x7] }
  0x13   : > { %vm3092_vm6 = vcmp.eq.s32.totalorder %v488_v56, 1  ;;  %vm3096_vm7 = vcmp.eq.s32.totalorder %v489_v58, 1  ;;  %vm494_vm8 = vcmp.eq.s32.totalorder %v3130_v39, 0  ;;  %vm502_vm11 = vcmp.eq.s32.totalorder %v3130_v39, 17 }
  0x14   : > { %v495_v40 = vsel %vm494_vm8, 1, %v2927_v0  ;;  %v3748_v58 = vmov 0 }
  0x15   : > { %v497_v44 = vperm.slane %v495_v40, 1 }
  0x17   : > { %v535_v3 = vld.sshfl [vmem:[#allocation1] sm:$0xff pattern:$0x75316420]  ;;  %v536_v4 = vld.sshfl [vmem:[#allocation1 + $0x8] sm:$0xff pattern:$0x75316420] }
  0x18   : > { %v537_v5 = vld.sshfl [vmem:[#allocation1 + $0x10] sm:$0xff pattern:$0x75316420]  ;;  %v541_v6 = vpack.c.bf16 %v536_v4, %v535_v3  ;;  %vm3144_vm8 = vcmp.eq.s32.totalorder %v497_v44, 1 }
  0x19   : > { %v542_v7 = vpack.c.bf16 %v537_v5, %v537_v5  ;;  %v3749_v58 = vsel %vm3144_vm8, 4294967295, %v3748_v58 }
  0x1a   : > { %v545_v8 = vrot.slane %v541_v6, 2 }
  0x1b   : > { %v546_v9 = vrot.slane %v542_v7, 4  ;;  %v547_v10 = vrot.slane %v542_v7, 6 }
  0x1c   : > { %v551_v11 = vsel %vm3720_vm2, %v541_v6, %v545_v8 }
  0x1d   : > { %v555_v12 = vsel %vm3704_vm3, %v546_v9, %v547_v10 }
  0x1e   : > { %v557_v13 = vsel %vm3700_vm4, %v551_v11, %v555_v12 }
  0x1f   : > { %559 = vrot.lane.b32.xlu0 %v557_v13, %s2928_s14 }
  0x91   : > { %v560_v14 = vpop.permute.xlu0 %559 }
  0x92   : > { %v561_v16 = vrot.slane %v560_v14, 6 }
  0x94   : > { %v563_v17 = vsel %vm3699_vm9, %v561_v16, %v560_v14 }
  0x95   : > { %570 = vst.msk [vmem:[#allocation2] sm:$0xff] %vm3044_vm10, %v563_v17 }
  0x9c   : > { %v571_v18 = vld [vmem:[#allocation2] sm:$0xff] }
  0x9d   : > { %v572_v19 = vunpack.c.l.bf16 %v571_v18  ;;  %v573_v20 = vunpack.c.h.bf16 %v571_v18 }
  0x9f   : > { %576 = vst [vmem:[#allocation1] ss:$2 sm:$0xff] %v572_v19 }
  0xa0   : > { %578 = vst [vmem:[#allocation1 + $0x10] ss:$2 sm:$0xff] %v573_v20 }
  0xa6   : > { %v579_v21 = vld.sshfl [vmem:[#allocation1] sm:$0xff pattern:$0x75316420]  ;;  %v580_v22 = vld.sshfl [vmem:[#allocation1 + $0x8] sm:$0xff pattern:$0x75316420] }
  0xa7   : > { %v581_v23 = vld.sshfl [vmem:[#allocation1 + $0x10] sm:$0xff pattern:$0x75316420]  ;;  %v582_v24 = vld.sshfl [vmem:[#allocation1 + $0x18] sm:$0xff pattern:$0x75316420]  ;;  %v2853_v25 = vpack.i.bf16 %v580_v22, %v579_v21 }
  0xa8   : > { %598 = vst [vmem:[#allocation1] ss:$2 sm:$0xff] %v3032_v1  ;;  %v2858_v26 = vpack.i.bf16 %v582_v24, %v581_v23 }
  0xa9   : > { %600 = vst [vmem:[#allocation1 + $0x10] ss:$2 sm:$0xff] %v3034_v2  ;;  %2854 = vrot.lane.b32.xlu0 %v2853_v25, %s2929_s15 }
  0xaa   : > { %2859 = vrot.lane.b32.xlu1 %v2858_v26, %s2929_s15 }
  0xaf   : > { %v601_v27 = vld.sshfl [vmem:[#allocation1] sm:$0xff pattern:$0x75316420]  ;;  %v602_v28 = vld.sshfl [vmem:[#allocation1 + $0x8] sm:$0xff pattern:$0x75316420] }
  0xb0   : > { %v603_v29 = vld.sshfl [vmem:[#allocation1 + $0x10] sm:$0xff pattern:$0x75316420]  ;;  %615 = vst [vmem:[#allocation1] ss:$2 sm:$0xff] %v572_v19 }
  0xb1   : > { %617 = vst [vmem:[#allocation1 + $0x10] ss:$2 sm:$0xff] %v573_v20 }
  0xb7   : > { %v618_v30 = vld.sshfl [vmem:[#allocation1] sm:$0xff pattern:$0x75316420]  ;;  %v619_v31 = vld.sshfl [vmem:[#allocation1 + $0x8] sm:$0xff pattern:$0x75316420] }
  0xb8   : > { %v620_v32 = vld.sshfl [vmem:[#allocation1 + $0x10] sm:$0xff pattern:$0x75316420]  ;;  %v621_v33 = vld.sshfl [vmem:[#allocation1 + $0x18] sm:$0xff pattern:$0x75316420]  ;;  %v2863_v34 = vpack.i.bf16 %v619_v31, %v618_v30 }
  0xb9   : > { %v2868_v35 = vpack.i.bf16 %v621_v33, %v620_v32 }
  0xba   : > { %2864 = vrot.lane.b32.xlu1 %v2863_v34, %s2930_s16 }
  0xbb   : > { %2869 = vrot.lane.b32.xlu2 %v2868_v35, %s2930_s16 }
 0x115   : > { %v2870_v43 = vpop.permute.xlu2 %2869 }
 0x116   : > { %v2872_v47 = vunpack.i.h.bf16 %v2870_v43  ;;  %v2871_v48 = vunpack.i.l.bf16 %v2870_v43  ;;  %v496_v43 = vperm.slane %v495_v40, 0 }
 0x118   : > { %v633_v57 = vsel %vm3697_vm15, %v2871_v48, %v2872_v47 }
 0x11b   : > { %v2855_v49 = vpop.permute.xlu0 %2854 }
 0x11c   : > { %v2860_v38 = vpop.permute.xlu1 %2859  ;;  %v2857_v54 = vunpack.i.h.bf16 %v2855_v49  ;;  %v2856_v55 = vunpack.i.l.bf16 %v2855_v49 }
 0x11d   : > { %v2862_v41 = vunpack.i.h.bf16 %v2860_v38  ;;  %v2861_v42 = vunpack.i.l.bf16 %v2860_v38 }
 0x11e   : > { %v592_v63 = vsel %vm3698_vm13, %v2856_v55, %v2857_v54 }
 0x11f   : > { %v594_v46 = vsel %vm3698_vm13, %v2861_v42, %v2862_v41  ;;  %v593_v62 = vsel %vm3698_vm13, %v2857_v54, %v2861_v42  ;;  %v607_v9 = vsel %vm3082_vm1, %v592_v63, %v601_v27  ;;  %v503_v41 = vsel %vm502_vm11, 1, %v2927_v0 }
 0x120   : > { %v609_v51 = vsel %vm3066_vm14, %v594_v46, %v603_v29  ;;  %v608_v10 = vsel %vm3086_vm5, %v593_v62, %v602_v28  ;;  %v498_v42 = vperm.slane %v495_v40, 2  ;;  %v504_v46 = vperm.slane %v503_v41, 0 }
 0x121   : > { %v3080_v59 = vsel %vm3071_vm0, %v633_v57, %v609_v51  ;;  %v505_v47 = vperm.slane %v503_v41, 1  ;;  %v3744_v51 = vmov 0  ;;  %vm3140_vm13 = vcmp.eq.s32.totalorder %v496_v43, 1 }
 0x122   : > { %v641_v8 = vpack.c.bf16 %v3080_v59, %v3080_v59  ;;  %vm3148_vm11 = vcmp.eq.s32.totalorder %v504_v46, 1  ;;  %v3750_v62 = vmov 0 }
 0x123   : > { %v3751_v62 = vsel %vm3148_vm11, 4294967295, %v3750_v62 }
 0x124   : > { %v645_v17 = vrot.slane %v641_v8, 4  ;;  %v646_v18 = vrot.slane %v641_v8, 6 }
 0x126   : > { %v652_v21 = vsel %vm3704_vm3, %v645_v17, %v646_v18 }
 0x12c   : > { %v2865_v4 = vpop.permute.xlu1 %2864 }
 0x12d   : > { %v2867_v6 = vunpack.i.h.bf16 %v2865_v4  ;;  %v2866_v7 = vunpack.i.l.bf16 %v2865_v4  ;;  %v3752_v4 = vmov 0 }
 0x12f   : > { %v632_v11 = vsel %vm3697_vm15, %v2867_v6, %v2871_v48  ;;  %v631_v12 = vsel %vm3697_vm15, %v2866_v7, %v2867_v6  ;;  %v506_v48 = vperm.slane %v503_v41, 2  ;;  %vm3136_vm15 = vcmp.eq.s32.totalorder %v498_v42, 1 }
 0x130   : > { %v3110_v13 = vsel %vm3096_vm7, %v632_v11, %v608_v10  ;;  %v3114_v14 = vsel %vm3092_vm6, %v631_v12, %v607_v9  ;;  %v3745_v51 = vsel %vm3136_vm15, 4294967295, %v3744_v51  ;;  %v3754_v6 = vmov 0 }
 0x131   : > { %v640_v16 = vpack.c.bf16 %v3110_v13, %v3114_v14 }
 0x133   : > { %v644_v19 = vrot.slane %v640_v16, 2 }
 0x135   : > { %v649_v20 = vsel %vm3720_vm2, %v640_v16, %v644_v19 }
 0x136   : > { %v653_v22 = vsel %vm3700_vm4, %v649_v20, %v652_v21  ;;  %vm3157_vm4 = vcmp.eq.s32.totalorder %v506_v48, 1 }
 0x137   : > { %655 = vrot.lane.b32.xlu2 %v653_v22, %s2928_s14  ;;  %v3755_v6 = vsel %vm3157_vm4, 4294967295, %v3754_v6 }
 0x191   : > { %v656_v23 = vpop.permute.xlu2 %655 }
 0x192   : > { %v657_v24 = vrot.slane %v656_v23, 6 }
 0x194   : > { %v658_v25 = vsel %vm3699_vm9, %v657_v24, %v656_v23  ;;  %vm3153_vm9 = vcmp.eq.s32.totalorder %v505_v47, 1 }
 0x195   : > { %660 = vst.msk [vmem:[#allocation2] sm:$0xff] %vm3044_vm10, %v658_v25  ;;  %v3753_v4 = vsel %vm3153_vm9, 4294967295, %v3752_v4 }
 0x19c   : > { %v661_v26 = vld [vmem:[#allocation2] sm:$0xff] }
 0x19d   : > { %v662_v27 = vunpack.c.l.bf16 %v661_v26  ;;  %v663_v28 = vunpack.c.h.bf16 %v661_v26  ;;  %v691_v29 = vld [vmem:[#allocation2] sm:$0x3f] }
 0x19e   : > { %v692_v32 = vunpack.c.l.bf16 %v691_v29  ;;  %v693_v35 = vunpack.c.h.bf16 %v691_v29 }
 0x19f   : > { %666 = vst [vmem:[#allocation1] ss:$2 sm:$0xff] %v662_v27 }
 0x1a0   : > { %668 = vst [vmem:[#allocation1 + $0x10] ss:$2 sm:$0xff] %v663_v28 }
 0x1a6   : > { %v669_v30 = vld.sshfl [vmem:[#allocation1] sm:$0xff pattern:$0x75316420]  ;;  %v670_v31 = vld.sshfl [vmem:[#allocation1 + $0x8] sm:$0xff pattern:$0x75316420] }
 0x1a7   : > { %v671_v33 = vld.sshfl [vmem:[#allocation1 + $0x10] sm:$0xff pattern:$0x75316420]  ;;  %v672_v34 = vld.sshfl [vmem:[#allocation1 + $0x18] sm:$0xff pattern:$0x75316420]  ;;  %v2873_v37 = vpack.i.bf16 %v670_v31, %v669_v30 }
 0x1a8   : > { %696 = vst [vmem:[#allocation1] ss:$2 sm:$0xff] %v692_v32  ;;  %v2878_v38 = vpack.i.bf16 %v672_v34, %v671_v33 }
 0x1a9   : > { %698 = vst [vmem:[#allocation1 + $0x10] ss:$2 sm:$0xff] %v693_v35  ;;  %2874 = vrot.lane.b32.xlu0 %v2873_v37, %s2931_s19 }
 0x1aa   : > { %2879 = vrot.lane.b32.xlu1 %v2878_v38, %s2931_s19 }
 0x1af   : > { %v699_v7 = vld.sshfl [vmem:[#allocation1] sm:$0xff pattern:$0x75316420]  ;;  %v700_v11 = vld.sshfl [vmem:[#allocation1 + $0x8] sm:$0xff pattern:$0x75316420] }
 0x1b0   : > { %v701_v12 = vld.sshfl [vmem:[#allocation1 + $0x10] sm:$0xff pattern:$0x75316420] }
 0x21b   : > { %v2875_v49 = vpop.permute.xlu0 %2874 }
 0x21c   : > { %v2880_v52 = vpop.permute.xlu1 %2879  ;;  %v2877_v54 = vunpack.i.h.bf16 %v2875_v49  ;;  %v2876_v55 = vunpack.i.l.bf16 %v2875_v49 }
 0x21d   : > { %v2882_v56 = vunpack.i.h.bf16 %v2880_v52  ;;  %v2881_v57 = vunpack.i.l.bf16 %v2880_v52 }
 0x21e   : > { %v682_v63 = vsel %vm3701_vm12, %v2876_v55, %v2877_v54 }
 0x21f   : > { %v684_v8 = vsel %vm3701_vm12, %v2881_v57, %v2882_v56  ;;  %v683_v9 = vsel %vm3701_vm12, %v2877_v54, %v2881_v57  ;;  %v688_v10 = vsel %vm3140_vm13, %v682_v63, %v3114_v14  ;;  %vm3756_vm12 = vcmask 1043456  }
 0x220   : > { %v690_v16 = vsel %vm3136_vm15, %v684_v8, %v3080_v59  ;;  %v689_v17 = vsel %vm3144_vm8, %v683_v9, %v3110_v13  ;;  %v705_v18 = vsel %vm3148_vm11, %v699_v7, %v688_v10  ;;  %vm3757_vm11 = vcmask 293888  }
 0x221   : > { %v706_v19 = vsel %vm3153_vm9, %v700_v11, %v689_v17  ;;  %v707_v20 = vsel %vm3157_vm4, %v701_v12, %v690_v16  ;;  %vm3758_vm4 = vcmask 908288   ;;  %vm515_vm9 = vcmp.le.s32.totalorder %v3130_v39, 16 }
 0x222   : > { %v708_v14 = vpack.c.bf16 %v706_v19, %v705_v18  ;;  %v709_v21 = vpack.c.bf16 %v707_v20, %v707_v20 }
 0x224   : > { %v712_v22 = vrot.slane %v708_v14, 2  ;;  %v713_v23 = vrot.slane %v709_v21, 4  ;;  %v714_v24 = vrot.slane %v709_v21, 6 }
 0x226   : > { %v717_v59 = vsel %vm3720_vm2, %v708_v14, %v712_v22  ;;  %v720_v25 = vsel %vm3704_vm3, %v713_v23, %v714_v24  ;;  %vm3710_vm3 = vcmask 908288  }
 0x227   : > { %v721_v13 = vsel %vm3756_vm12, %v717_v59, %v720_v25  ;;  %vm3705_vm12 = vcmask 900096  }
 0x228   : > { %723 = vrot.lane.b32.xlu2 %v721_v13, %s2928_s14 }
 0x282   : > { %v724_v26 = vpop.permute.xlu2 %723 }
 0x283   : > { %v725_v27 = vrot.slane %v724_v26, 6 }
 0x285   : > { %v726_v28 = vsel %vm3757_vm11, %v725_v27, %v724_v26  ;;  %vm3719_vm11 = vcmask 31744  }
 0x286   : > { %728 = vst.msk [vmem:[#allocation2] sm:$0xff] %vm3044_vm10, %v726_v28  ;;  %v2746_v28 = vld [vmem:[%s3688_s5 + $0x2] sm:$0x3] }
 0x28d   : > { %v3185_v29 = vld [vmem:[#allocation2] sm:$0xff] }
 0x28e   : > { %734 = vst [vmem:[#allocation1] ss:$4 sm:$0xff] %v3185_v29 }
 0x295   : > { %v735_v30 = vld.sshfl [vmem:[#allocation1] sm:$0xff pattern:$0x73625140]  ;;  %v737_v31 = vld.sshfl [vmem:[#allocation1 + $0x8] sm:$0xff pattern:$0x73625140] }
 0x296   : > { %v739_v32 = vld.sshfl [vmem:[#allocation1 + $0x10] sm:$0xff pattern:$0x73625140]  ;;  %v741_v33 = vld.sshfl [vmem:[#allocation1 + $0x18] sm:$0xff pattern:$0x73625140]  ;;  %743 = vrot.lane.b32.xlu2 %v735_v30, %s2932_s22 }
 0x297   : > { %807 = vst [vmem:[#allocation1] ss:$4 sm:$0xff] %v3185_v29  ;;  %749 = vrot.lane.b32.xlu1 %v741_v33, %s2932_s22  ;;  %747 = vrot.lane.b32.xlu0 %v739_v32, %s2932_s22 }
 0x29e   : > { %v808_v34 = vld.sshfl [vmem:[#allocation1] sm:$0xff pattern:$0x73625140]  ;;  %v810_v35 = vld.sshfl [vmem:[#allocation1 + $0x8] sm:$0xff pattern:$0x73625140] }
 0x29f   : > { %v812_v37 = vld.sshfl [vmem:[#allocation1 + $0x10] sm:$0xff pattern:$0x73625140]  ;;  %v814_v38 = vld.sshfl [vmem:[#allocation1 + $0x18] sm:$0xff pattern:$0x73625140]  ;;  %745 = vrot.lane.b32.xlu0 %v737_v31, %s2932_s22  ;;  %818 = vrot.lane.b32.xlu2 %v810_v35, %s2933_s23 }
 0x2a0   : > { %883 = vst [vmem:[#allocation1] ss:$4 sm:$0xff] %v3185_v29  ;;  %816 = vrot.lane.b32.xlu1 %v808_v34, %s2933_s23 }
 0x2a7   : > { %v884_v40 = vld.sshfl [vmem:[#allocation1] sm:$0xff pattern:$0x73625140]  ;;  %v886_v41 = vld.sshfl [vmem:[#allocation1 + $0x8] sm:$0xff pattern:$0x73625140]  ;;  %820 = vrot.lane.b32.xlu2 %v812_v37, %s2933_s23 }
 0x2a8   : > { %v888_v42 = vld.sshfl [vmem:[#allocation1 + $0x10] sm:$0xff pattern:$0x73625140]  ;;  %v890_v43 = vld.sshfl [vmem:[#allocation1 + $0x18] sm:$0xff pattern:$0x73625140]  ;;  %894 = vrot.lane.b32.xlu1 %v886_v41, %s2934_s24  ;;  %892 = vrot.lane.b32.xlu0 %v884_v40, %s2934_s24 }
 0x2a9   : > { %962 = vst [vmem:[#allocation1] ss:$4 sm:$0xff] %v3185_v29 }
 0x2b0   : > { %v963_v44 = vld.sshfl [vmem:[#allocation1] sm:$0xff pattern:$0x73625140]  ;;  %v965_v46 = vld.sshfl [vmem:[#allocation1 + $0x8] sm:$0xff pattern:$0x73625140]  ;;  %896 = vrot.lane.b32.xlu1 %v888_v42, %s2934_s24  ;;  %822 = vrot.lane.b32.xlu0 %v814_v38, %s2933_s23 }
 0x2b1   : > { %v967_v47 = vld.sshfl [vmem:[#allocation1 + $0x10] sm:$0xff pattern:$0x73625140]  ;;  %v969_v48 = vld.sshfl [vmem:[#allocation1 + $0x18] sm:$0xff pattern:$0x73625140]  ;;  %973 = vrot.lane.b32.xlu2 %v965_v46, %s2935_s28 }
 0x2b2   : > { %1041 = vst [vmem:[#allocation1] ss:$4 sm:$0xff] %v3185_v29  ;;  %v729_v42 = vld [vmem:[%s3688_s5] sm:$0x3] }
 0x2b8   : > { %898 = vrot.lane.b32.xlu1 %v890_v43, %s2934_s24  ;;  %975 = vrot.lane.b32.xlu0 %v967_v47, %s2935_s28 }
 0x2b9   : > { %v1042_v49 = vld.sshfl [vmem:[#allocation1] sm:$0xff pattern:$0x73625140]  ;;  %v1044_v52 = vld.sshfl [vmem:[#allocation1 + $0x8] sm:$0xff pattern:$0x73625140]  ;;  %971 = vrot.lane.b32.xlu2 %v963_v44, %s2935_s28 }
 0x2ba   : > { %v1046_v54 = vld.sshfl [vmem:[#allocation1 + $0x10] sm:$0xff pattern:$0x73625140]  ;;  %v1048_v55 = vld.sshfl [vmem:[#allocation1 + $0x18] sm:$0xff pattern:$0x73625140] }
 0x2bb   : > { %1120 = vst [vmem:[#allocation1] ss:$4 sm:$0xff] %v3185_v29 }
 0x2c0   : > { %977 = vrot.lane.b32.xlu0 %v969_v48, %s2935_s28  ;;  %1054 = vrot.lane.b32.xlu1 %v1046_v54, %s2936_s29 }
 0x2c1   : > { %1056 = vrot.lane.b32.xlu2 %v1048_v55, %s2936_s29 }
 0x2c2   : > { %v1125_v56 = vld.sshfl [vmem:[#allocation1 + $0x10] sm:$0xff pattern:$0x73625140]  ;;  %v1127_v57 = vld.sshfl [vmem:[#allocation1 + $0x18] sm:$0xff pattern:$0x73625140] }
 0x2c3   : > { %v1121_v63 = vld.sshfl [vmem:[#allocation1] sm:$0xff pattern:$0x73625140]  ;;  %v1123_v7 = vld.sshfl [vmem:[#allocation1 + $0x8] sm:$0xff pattern:$0x73625140] }
 0x2c4   : > { %1199 = vst [vmem:[#allocation1] ss:$4 sm:$0xff] %v3185_v29 }
 0x2c8   : > { %1052 = vrot.lane.b32.xlu1 %v1044_v52, %s2936_s29  ;;  %1050 = vrot.lane.b32.xlu0 %v1042_v49, %s2936_s29  ;;  %v2753_v49 = vld [vmem:[%s3688_s5 + $0x4] sm:$0x3] }
 0x2c9   : > { %1129 = vrot.lane.b32.xlu2 %v1121_v63, %s3726_s30 }
 0x2cb   : > { %v1202_v8 = vld.sshfl [vmem:[#allocation1 + $0x8] sm:$0xff pattern:$0x73625140]  ;;  %v1200_v9 = vld.sshfl [vmem:[#allocation1] sm:$0xff pattern:$0x73625140] }
 0x2cc   : > { %v1204_v10 = vld.sshfl [vmem:[#allocation1 + $0x10] sm:$0xff pattern:$0x73625140]  ;;  %v1206_v11 = vld.sshfl [vmem:[#allocation1 + $0x18] sm:$0xff pattern:$0x73625140] }
 0x2cd   : > { %1278 = vst [vmem:[#allocation1] ss:$4 sm:$0xff] %v3185_v29 }
 0x2d0   : > { %1131 = vrot.lane.b32.xlu0 %v1123_v7, %s3726_s30  ;;  %1208 = vrot.lane.b32.xlu1 %v1200_v9, %s3724_s17 }
 0x2d1   : > { %1210 = vrot.lane.b32.xlu2 %v1202_v8, %s3724_s17 }
 0x2d4   : > { %v1283_v12 = vld.sshfl [vmem:[#allocation1 + $0x10] sm:$0xff pattern:$0x73625140]  ;;  %v1281_v16 = vld.sshfl [vmem:[#allocation1 + $0x8] sm:$0xff pattern:$0x73625140] }
 0x2d5   : > { %v1285_v17 = vld.sshfl [vmem:[#allocation1 + $0x18] sm:$0xff pattern:$0x73625140]  ;;  %v1279_v18 = vld.sshfl [vmem:[#allocation1] sm:$0xff pattern:$0x73625140] }
 0x2d6   : > { %1357 = vst [vmem:[#allocation1] ss:$4 sm:$0xff] %v3185_v29 }
 0x2d8   : > { %1133 = vrot.lane.b32.xlu0 %v1125_v56, %s3726_s30  ;;  %1135 = vrot.lane.b32.xlu1 %v1127_v57, %s3726_s30 }
 0x2d9   : > { %1212 = vrot.lane.b32.xlu2 %v1204_v10, %s3724_s17 }
 0x2dd   : > { %v1362_v19 = vld.sshfl [vmem:[#allocation1 + $0x10] sm:$0xff pattern:$0x73625140]  ;;  %v1364_v20 = vld.sshfl [vmem:[#allocation1 + $0x18] sm:$0xff pattern:$0x73625140] }
 0x2de   : > { %v1358_v14 = vld.sshfl [vmem:[#allocation1] sm:$0xff pattern:$0x73625140]  ;;  %v1360_v21 = vld.sshfl [vmem:[#allocation1 + $0x8] sm:$0xff pattern:$0x73625140] }
 0x2e0   : > { %1291 = vrot.lane.b32.xlu1 %v1283_v12, %s3708_s18  ;;  %1289 = vrot.lane.b32.xlu0 %v1281_v16, %s3708_s18 }
 0x2e1   : > { %1214 = vrot.lane.b32.xlu2 %v1206_v11, %s3724_s17 }
 0x2e8   : > { %1293 = vrot.lane.b32.xlu1 %v1285_v17, %s3708_s18  ;;  %1287 = vrot.lane.b32.xlu0 %v1279_v18, %s3708_s18  ;;  %s2743_s18 = sshll.u32 %s3897_s26, 3 }
 0x2e9   : > { %1370 = vrot.lane.b32.xlu2 %v1362_v19, %s3706_s20  ;;  %v2757_v19 = vld [vmem:[%s3688_s5 + $0x6] sm:$0x3]  ;;  %s465_s21 = scalar_lea.vmem %s3684_s1, %s2743_s18  ;;  %s469_s30 = scalar_lea.vmem %s3685_s2, %s2743_s18 }
 0x2f0   : > { %1372 = vrot.lane.b32.xlu0 %v1364_v20, %s3706_s20  ;;  %1366 = vrot.lane.b32.xlu1 %v1358_v14, %s3706_s20  ;;  %v744_v22 = vpop.permute.xlu2 %743 }
 0x2f1   : > { %1368 = vrot.lane.b32.xlu2 %v1360_v21, %s3706_s20 }
 0x2f9   : > { %v819_v23 = vpop.permute.xlu2 %818 }
 0x301   : > { %v821_v24 = vpop.permute.xlu2 %820 }
 0x302   : > { %v826_v30 = vsel %vm3710_vm3, %v819_v23, %v821_v24 }
 0x303   : > { %v835_v41 = vsel %vm3720_vm2, %v826_v30, 0 }
 0x309   : > { %v750_v59 = vpop.permute.xlu1 %749  ;;  %v748_v25 = vpop.permute.xlu0 %747 }
 0x30a   : > { %v754_v13 = vsel %vm3705_vm12, %v748_v25, %v750_v59 }
 0x30b   : > { %v974_v26 = vpop.permute.xlu2 %973  ;;  %v766_v27 = vsel %vm3720_vm2, %v754_v13, 0 }
 0x30c   : > { %801 = vmatpush.bf16.msra.mxu2 %v766_v27 }
 0x30f   : > { %2749 = vmatmul.msk.bf16.vlgmr.msra.gmra.mxu2 %vm3719_vm11, %v2746_v28 }
 0x311   : > { %v746_v29 = vpop.permute.xlu0 %745 }
 0x312   : > { %v817_v31 = vpop.permute.xlu1 %816  ;;  %v752_v32 = vsel %vm3705_vm12, %v744_v22, %v746_v29  ;;  %v753_v33 = vsel %vm3705_vm12, %v746_v29, %v748_v25  ;;  %vm3713_vm12 = vcmask 891904  }
 0x313   : > { %v972_v34 = vpop.permute.xlu2 %971  ;;  %v760_v35 = vsel %vm3720_vm2, %v752_v32, 0  ;;  %v763_v37 = vsel %vm3720_vm2, %v753_v33, 0  ;;  %v825_v38 = vsel %vm3710_vm3, %v817_v31, %v819_v23  ;;  %vm3712_vm3 = vcmask 760832   ;;  %v2761_v31 = vld [vmem:[%s3688_s5 + $0x8] sm:$0x3] }
 0x314   : > { %775 = vmatpush.bf16.msra.mxu0 %v760_v35  ;;  %788 = vmatpush.bf16.msra.mxu1 %v763_v37  ;;  %v832_v40 = vsel %vm3720_vm2, %v825_v38, 0  ;;  %v980_v52 = vsel %vm3712_vm3, %v972_v34, %v974_v26 }
 0x315   : > { %847 = vmatpush.bf16.msra.mxu3 %v832_v40  ;;  %v987_v8 = vsel %vm3720_vm2, %v980_v52, 0 }
 0x317   : > { %2747 = vmatmul.msk.bf16.vlgmr.msra.gmra.mxu0 %vm3719_vm11, %v2746_v28  ;;  %2748 = vmatmul.msk.bf16.vlgmr.msra.gmra.mxu1 %vm3719_vm11, %v2746_v28 }
 0x318   : > { %860 = vmatpush.bf16.msrb.mxu0 %v835_v41  ;;  %2750 = vmatmul.msk.bf16.vlgmr.msra.gmra.mxu3 %vm3719_vm11, %v729_v42 }
 0x31a   : > { %v895_v43 = vpop.permute.xlu1 %894  ;;  %v893_v44 = vpop.permute.xlu0 %892 }
 0x31b   : > { %v1057_v46 = vpop.permute.xlu2 %1056  ;;  %v901_v47 = vsel %vm3713_vm12, %v893_v44, %v895_v43 }
 0x31c   : > { %v908_v48 = vsel %vm3720_vm2, %v901_v47, 0 }
 0x31d   : > { %923 = vmatpush.bf16.msrb.mxu2 %v908_v48 }
 0x320   : > { %2754 = vmatmul.msk.bf16.vlgmr.msrb.gmra.mxu2 %vm3719_vm11, %v2753_v49 }
 0x322   : > { %v897_v54 = vpop.permute.xlu1 %896  ;;  %v823_v55 = vpop.permute.xlu0 %822 }
 0x323   : > { %v827_v56 = vsel %vm3758_vm4, %v821_v24, %v823_v55  ;;  %v902_v57 = vsel %vm3713_vm12, %v895_v43, %v897_v54  ;;  %v1130_v9 = vpop.permute.xlu2 %1129  ;;  %vm3718_vm4 = vcmask 752640   ;;  %v2765_v43 = vld [vmem:[%s3688_s5 + $0xa] sm:$0x3] }
 0x324   : > { %v838_v63 = vsel %vm3720_vm2, %v827_v56, 0  ;;  %v911_v7 = vsel %vm3720_vm2, %v902_v57, 0  ;;  %v2769_v57 = vld [vmem:[%s3688_s5 + $0xc] sm:$0x3] }
 0x325   : > { %873 = vmatpush.bf16.msrb.mxu1 %v838_v63  ;;  %936 = vmatpush.bf16.msrb.mxu3 %v911_v7 }
 0x327   : > { %2751 = vmatmul.msk.bf16.vlgmr.msrb.gmra.mxu0 %vm3719_vm11, %v729_v42 }
 0x328   : > { %2752 = vmatmul.msk.bf16.vlgmr.msrb.gmra.mxu1 %vm3719_vm11, %v729_v42  ;;  %2755 = vmatmul.msk.bf16.vlgmr.msrb.gmra.mxu3 %vm3719_vm11, %v2753_v49 }
 0x329   : > { %1002 = vmatpush.bf16.msra.mxu1 %v987_v8 }
 0x32a   : > { %v899_v10 = vpop.permute.xlu1 %898  ;;  %v976_v11 = vpop.permute.xlu0 %975 }
 0x32b   : > { %v903_v12 = vsel %vm3713_vm12, %v897_v54, %v899_v10  ;;  %v981_v16 = vsel %vm3712_vm3, %v974_v26, %v976_v11  ;;  %v1211_v20 = vpop.permute.xlu2 %1210  ;;  %vm3715_vm12 = vcmask 744448  }
 0x32c   : > { %v914_v17 = vsel %vm3720_vm2, %v903_v12, 0  ;;  %v990_v18 = vsel %vm3720_vm2, %v981_v16, 0 }
 0x32d   : > { %949 = vmatpush.bf16.msra.mxu0 %v914_v17  ;;  %1015 = vmatpush.bf16.msra.mxu2 %v990_v18 }
 0x330   : > { %2759 = vmatmul.msk.bf16.vlgmr.msra.gmra.mxu2 %vm3719_vm11, %v2757_v19 }
 0x332   : > { %v978_v14 = vpop.permute.xlu0 %977  ;;  %v1055_v21 = vpop.permute.xlu1 %1054 }
 0x333   : > { %v982_v22 = vsel %vm3712_vm3, %v976_v11, %v978_v14  ;;  %v1061_v23 = vsel %vm3718_vm4, %v1055_v21, %v1057_v46  ;;  %v1213_v25 = vpop.permute.xlu2 %1212  ;;  %vm3714_vm3 = vcmask 613376  }
 0x334   : > { %v993_v24 = vsel %vm3720_vm2, %v982_v22, 0  ;;  %v1072_v59 = vsel %vm3720_vm2, %v1061_v23, 0  ;;  %v1218_v32 = vsel %vm3714_vm3, %v1211_v20, %v1213_v25 }
 0x335   : > { %1028 = vmatpush.bf16.msra.mxu3 %v993_v24  ;;  %1107 = vmatpush.bf16.msrb.mxu2 %v1072_v59  ;;  %v1227_v42 = vsel %vm3720_vm2, %v1218_v32, 0 }
 0x337   : > { %2756 = vmatmul.msk.bf16.vlgmr.msra.gmra.mxu0 %vm3719_vm11, %v2753_v49 }
 0x338   : > { %2758 = vmatmul.msk.bf16.vlgmr.msra.gmra.mxu1 %vm3719_vm11, %v2757_v19  ;;  %2760 = vmatmul.msk.bf16.vlgmr.msra.gmra.mxu3 %vm3719_vm11, %v2757_v19 }
 0x33a   : > { %v1053_v13 = vpop.permute.xlu1 %1052  ;;  %v1051_v26 = vpop.permute.xlu0 %1050 }
 0x33b   : > { %v1060_v27 = vsel %vm3718_vm4, %v1053_v13, %v1055_v21  ;;  %v1059_v28 = vsel %vm3718_vm4, %v1051_v26, %v1053_v13  ;;  %v1215_v35 = vpop.permute.xlu2 %1214  ;;  %v2773_v21 = vld [vmem:[%s3688_s5 + $0xe] sm:$0x3]  ;;  %v2777_v26 = vld [vmem:[%s3688_s5 + $0x10] sm:$0x3] }
 0x33c   : > { %v1069_v29 = vsel %vm3720_vm2, %v1060_v27, 0  ;;  %v1066_v30 = vsel %vm3720_vm2, %v1059_v28, 0  ;;  %v1219_v44 = vsel %vm3714_vm3, %v1213_v25, %v1215_v35 }
 0x33d   : > { %1081 = vmatpush.bf16.msrb.mxu0 %v1066_v30  ;;  %1094 = vmatpush.bf16.msrb.mxu1 %v1069_v29  ;;  %v1230_v55 = vsel %vm3720_vm2, %v1219_v44, 0 }
 0x340   : > { %2764 = vmatmul.msk.bf16.vlgmr.msrb.gmra.mxu2 %vm3719_vm11, %v2761_v31 }
 0x342   : > { %v1132_v33 = vpop.permute.xlu0 %1131  ;;  %v1209_v34 = vpop.permute.xlu1 %1208 }
 0x343   : > { %v1138_v37 = vsel %vm3715_vm12, %v1130_v9, %v1132_v33  ;;  %v1217_v38 = vsel %vm3714_vm3, %v1209_v34, %v1211_v20  ;;  %v1371_v56 = vpop.permute.xlu2 %1370  ;;  %vm3717_vm3 = vcmask 605184  }
 0x344   : > { %v1145_v40 = vsel %vm3720_vm2, %v1138_v37, 0  ;;  %v1224_v41 = vsel %vm3720_vm2, %v1217_v38, 0 }
 0x345   : > { %1160 = vmatpush.bf16.msrb.mxu3 %v1145_v40  ;;  %1239 = vmatpush.bf16.msra.mxu2 %v1224_v41 }
 0x347   : > { %2762 = vmatmul.msk.bf16.vlgmr.msrb.gmra.mxu0 %vm3719_vm11, %v2761_v31 }
 0x348   : > { %2763 = vmatmul.msk.bf16.vlgmr.msrb.gmra.mxu1 %vm3719_vm11, %v2761_v31  ;;  %2766 = vmatmul.msk.bf16.vlgmr.msrb.gmra.mxu3 %vm3719_vm11, %v2765_v43 }
 0x349   : > { %1252 = vmatpush.bf16.msra.mxu3 %v1227_v42 }
 0x34a   : > { %v1134_v46 = vpop.permute.xlu0 %1133  ;;  %v1136_v47 = vpop.permute.xlu1 %1135 }
 0x34b   : > { %v1139_v48 = vsel %vm3715_vm12, %v1132_v33, %v1134_v46  ;;  %v1140_v49 = vsel %vm3715_vm12, %v1134_v46, %v1136_v47  ;;  %vm3716_vm12 = vcmask 596992   ;;  %v1369_v10 = vpop.permute.xlu2 %1368 }
 0x34c   : > { %v1148_v52 = vsel %vm3720_vm2, %v1139_v48, 0  ;;  %v1151_v54 = vsel %vm3720_vm2, %v1140_v49, 0  ;;  %v1376_v11 = vsel %vm3716_vm12, %v1369_v10, %v1371_v56 }
 0x34d   : > { %1173 = vmatpush.bf16.msra.mxu0 %v1148_v52  ;;  %1186 = vmatpush.bf16.msra.mxu1 %v1151_v54  ;;  %v1385_v14 = vsel %vm3720_vm2, %v1376_v11, 0 }
 0x350   : > { %2770 = vmatmul.msk.bf16.vlgmr.msra.gmra.mxu2 %vm3719_vm11, %v2769_v57 }
 0x351   : > { %1265 = vmatpush.bf16.msrb.mxu0 %v1230_v55 }
 0x352   : > { %v1292_v63 = vpop.permute.xlu1 %1291  ;;  %v1290_v7 = vpop.permute.xlu0 %1289 }
 0x353   : > { %v1297_v8 = vsel %vm3717_vm3, %v1290_v7, %v1292_v63 }
 0x354   : > { %v1306_v9 = vsel %vm3720_vm2, %v1297_v8, 0 }
 0x355   : > { %1331 = vmatpush.bf16.msrb.mxu2 %v1306_v9 }
 0x357   : > { %2767 = vmatmul.msk.bf16.vlgmr.msra.gmra.mxu0 %vm3719_vm11, %v2765_v43 }
 0x358   : > { %2768 = vmatmul.msk.bf16.vlgmr.msra.gmra.mxu1 %vm3719_vm11, %v2765_v43  ;;  %2771 = vmatmul.msk.bf16.vlgmr.msra.gmra.mxu3 %vm3719_vm11, %v2769_v57 }
 0x35a   : > { %v1294_v12 = vpop.permute.xlu1 %1293  ;;  %v1288_v16 = vpop.permute.xlu0 %1287 }
 0x35b   : > { %v1298_v17 = vsel %vm3717_vm3, %v1292_v63, %v1294_v12  ;;  %v1296_v18 = vsel %vm3717_vm3, %v1288_v16, %v1290_v7  ;;  %vm511_vm3 = vcmp.le.s32.totalorder %v3060_v36, 16 }
 0x35c   : > { %v1309_v19 = vsel %vm3720_vm2, %v1298_v17, 0  ;;  %v1303_v20 = vsel %vm3720_vm2, %v1296_v18, 0 }
 0x35d   : > { %1318 = vmatpush.bf16.msrb.mxu1 %v1303_v20  ;;  %1344 = vmatpush.bf16.msrb.mxu3 %v1309_v19 }
 0x360   : > { %2775 = vmatmul.msk.bf16.vlgmr.msrb.gmra.mxu2 %vm3719_vm11, %v2773_v21 }
 0x361   : > { %1410 = vmatpush.bf16.msra.mxu1 %v1385_v14 }
 0x362   : > { %v1373_v22 = vpop.permute.xlu0 %1372  ;;  %v1367_v23 = vpop.permute.xlu1 %1366 }
 0x363   : > { %v1377_v24 = vsel %vm3716_vm12, %v1371_v56, %v1373_v22  ;;  %v1375_v59 = vsel %vm3716_vm12, %v1367_v23, %v1369_v10  ;;  %vm510_vm12 = vcmp.ge.s32.totalorder %v3060_v36, 1 }
 0x364   : > { %v1388_v25 = vsel %vm3720_vm2, %v1377_v24, 0  ;;  %v1382_v13 = vsel %vm3720_vm2, %v1375_v59, 0  ;;  %vm512_vm4 = vmand %vm510_vm12, %vm511_vm3 }
 0x365   : > { %1397 = vmatpush.bf16.msra.mxu0 %v1382_v13  ;;  %1423 = vmatpush.bf16.msra.mxu2 %v1388_v25 }
 0x367   : > { %2772 = vmatmul.msk.bf16.vlgmr.msrb.gmra.mxu0 %vm3719_vm11, %v2769_v57 }
 0x368   : > { %2774 = vmatmul.msk.bf16.vlgmr.msrb.gmra.mxu1 %vm3719_vm11, %v2773_v21  ;;  %2776 = vmatmul.msk.bf16.vlgmr.msrb.gmra.mxu3 %vm3719_vm11, %v2773_v21 }
 0x370   : > { %2780 = vmatmul.msk.bf16.vlgmr.msra.gmra.mxu2 %vm3719_vm11, %v2777_v26 }
 0x377   : > { %2778 = vmatmul.msk.bf16.vlgmr.msra.gmra.mxu0 %vm3719_vm11, %v2777_v26 }
 0x378   : > { %2779 = vmatmul.msk.bf16.vlgmr.msra.gmra.mxu1 %vm3719_vm11, %v2777_v26  ;;  %vm513_vm11 = vcmp.ge.s32.totalorder %v3130_v39, 1 }
 0x379   : > { %vm514_vm2 = vmand %vm512_vm4, %vm513_vm11 }
 0x37a   : > { %vm516_vm15 = vmand %vm514_vm2, %vm515_vm9 }
 0x392   : > { %v803_v27 = vpop.f32.mrf.mxu2 }
 0x394   : > { %v777_v28 = vpop.f32.mrf.mxu0  ;;  %v790_v29 = vpop.f32.mrf.mxu1 }
 0x39a   : > { %v805_v30 = vpop.f32.mrf.mxu2 }
 0x39b   : > { %v849_v31 = vpop.f32.mrf.mxu3 }
 0x39c   : > { %v850_v32 = vadd.f32 %v849_v31, %v777_v28  ;;  %v779_v33 = vpop.f32.mrf.mxu0  ;;  %v792_v34 = vpop.f32.mrf.mxu1 }
 0x3a3   : > { %v851_v35 = vpop.f32.mrf.mxu3  ;;  %v925_v37 = vpop.f32.mrf.mxu2 }
 0x3a4   : > { %v955_v38 = vadd.f32 %v925_v37, %v850_v32  ;;  %v862_v40 = vpop.f32.mrf.mxu0 }
 0x3a5   : > { %v863_v41 = vadd.f32 %v862_v40, %v790_v29  ;;  %v875_v42 = vpop.f32.mrf.mxu1 }
 0x3a6   : > { %v876_v43 = vadd.f32 %v875_v42, %v803_v27 }
 0x3ab   : > { %v927_v44 = vpop.f32.mrf.mxu2  ;;  %v938_v46 = vpop.f32.mrf.mxu3 }
 0x3ac   : > { %v864_v47 = vpop.f32.mrf.mxu0  ;;  %v956_v29 = vadd.f32 %v938_v46, %v863_v41 }
 0x3ad   : > { %v877_v48 = vpop.f32.mrf.mxu1  ;;  %v517_v47 = vsel %vm516_vm15, 1, %v2927_v0  ;;  %vm3765_vm15 = vcmask 1043456  }
 0x3ae   : > { %v519_v41 = vperm.slane %v517_v47, 1  ;;  %v520_v46 = vperm.slane %v517_v47, 2  ;;  %vm3766_vm12 = vmmov %vm3765_vm15 }
 0x3af   : > { %vm3767_vm11 = vmmov %vm3766_vm12 }
 0x3b0   : > { %vm3351_vm3 = vcmp.eq.s32.totalorder %v519_v41, 1  ;;  %vm3355_vm9 = vcmp.eq.s32.totalorder %v520_v46, 1  ;;  %vm3768_vm4 = vmmov %vm3767_vm11 }
 0x3b1   : > { %vm3769_vm8 = vmmov %vm3768_vm4 }
 0x3b3   : > { %v940_v49 = vpop.f32.mrf.mxu3  ;;  %v1017_v52 = vpop.f32.mrf.mxu2 }
 0x3b4   : > { %v951_v54 = vpop.f32.mrf.mxu0  ;;  %v1035_v34 = vadd.f32 %v1017_v52, %v956_v29 }
 0x3b5   : > { %v1004_v55 = vpop.f32.mrf.mxu1  ;;  %v957_v28 = vadd.f32 %v951_v54, %v876_v43  ;;  %v518_v54 = vperm.slane %v517_v47, 0 }
 0x3b6   : > { %v1034_v31 = vadd.f32 %v1004_v55, %v955_v38 }
 0x3b7   : > { %vm3347_vm2 = vcmp.eq.s32.totalorder %v518_v54, 1  ;;  %v1545_v54 = vld [vmem:[%s3691_s8] sm:$0xf] }
 0x3bb   : > { %v1019_v56 = vpop.f32.mrf.mxu2  ;;  %v1030_v57 = vpop.f32.mrf.mxu3 }
 0x3bc   : > { %v953_v63 = vpop.f32.mrf.mxu0  ;;  %v1036_v30 = vadd.f32 %v1030_v57, %v957_v28 }
 0x3bd   : > { %v1006_v7 = vpop.f32.mrf.mxu1 }
 0x3c3   : > { %v1032_v8 = vpop.f32.mrf.mxu3  ;;  %v1109_v9 = vpop.f32.mrf.mxu2 }
 0x3c4   : > { %v1083_v10 = vpop.f32.mrf.mxu0  ;;  %v1115_v35 = vadd.f32 %v1109_v9, %v1036_v30 }
 0x3c5   : > { %v1096_v11 = vpop.f32.mrf.mxu1  ;;  %v1113_v37 = vadd.f32 %v1083_v10, %v1034_v31 }
 0x3c6   : > { %v1114_v42 = vadd.f32 %v1096_v11, %v1035_v34 }
 0x3cb   : > { %v1111_v12 = vpop.f32.mrf.mxu2  ;;  %v1162_v16 = vpop.f32.mrf.mxu3 }
 0x3cc   : > { %v1085_v17 = vpop.f32.mrf.mxu0  ;;  %v1192_v48 = vadd.f32 %v1162_v16, %v1113_v37  ;;  %v3763_v12 = vmov 0 }
 0x3cd   : > { %v1098_v18 = vpop.f32.mrf.mxu1  ;;  %v3764_v12 = vsel %vm3355_vm9, 4294967295, %v3763_v12 }
 0x3d3   : > { %v1164_v19 = vpop.f32.mrf.mxu3  ;;  %v1241_v20 = vpop.f32.mrf.mxu2 }
 0x3d4   : > { %v1175_v14 = vpop.f32.mrf.mxu0  ;;  %v1271_v39 = vadd.f32 %v1241_v20, %v1192_v48  ;;  %v1481_v48 = vld [vmem:[%s465_s21] sm:$0xff] }
 0x3d5   : > { %v1188_v21 = vpop.f32.mrf.mxu1  ;;  %v1193_v43 = vadd.f32 %v1175_v14, %v1114_v42  ;;  %1484 = vperm.xlu2 %2883, %v1481_v48  }
 0x3d6   : > { %v1194_v44 = vadd.f32 %v1188_v21, %v1115_v35 }
 0x3db   : > { %v1243_v22 = vpop.f32.mrf.mxu2  ;;  %v1254_v23 = vpop.f32.mrf.mxu3 }
 0x3dc   : > { %v1177_v24 = vpop.f32.mrf.mxu0  ;;  %v1272_v38 = vadd.f32 %v1254_v23, %v1193_v43 }
 0x3dd   : > { %v1190_v59 = vpop.f32.mrf.mxu1  ;;  %1548 = vperm.xlu2 %2883, %v1545_v54  }
 0x3e3   : > { %v1256_v25 = vpop.f32.mrf.mxu3  ;;  %v1333_v13 = vpop.f32.mrf.mxu2 }
 0x3e4   : > { %v1267_v26 = vpop.f32.mrf.mxu0  ;;  %v1351_v63 = vadd.f32 %v1333_v13, %v1272_v38 }
 0x3e5   : > { %v1320_v27 = vpop.f32.mrf.mxu1  ;;  %v1273_v49 = vadd.f32 %v1267_v26, %v1194_v44 }
 0x3e6   : > { %v1350_v56 = vadd.f32 %v1320_v27, %v1271_v39 }
 0x3eb   : > { %v1335_v32 = vpop.f32.mrf.mxu2  ;;  %v1346_v33 = vpop.f32.mrf.mxu3 }
 0x3ec   : > { %v1269_v36 = vpop.f32.mrf.mxu0  ;;  %v1352_v55 = vadd.f32 %v1346_v33, %v1273_v49 }
 0x3ed   : > { %v1322_v40 = vpop.f32.mrf.mxu1 }
 0x3f3   : > { %v1425_v57 = vpop.f32.mrf.mxu2  ;;  %v1348_v52 = vpop.f32.mrf.mxu3 }
 0x3f4   : > { %v3345_v7 = vadd.f32 %v1425_v57, %v1352_v55  ;;  %v1399_v0 = vpop.f32.mrf.mxu0 }
 0x3f5   : > { %v1429_v9 = vadd.f32 %v1399_v0, %v1350_v56  ;;  %v1412_v11 = vpop.f32.mrf.mxu1 }
 0x3f6   : > { %v1444_v16 = vmul.f32 %v3345_v7, %v3345_v7  ;;  %v1430_v17 = vadd.f32 %v1412_v11, %v1351_v63  ;;  %v1434_v21 = vsel %vm3355_vm9, %v3345_v7, 0.0 }
 0x3f7   : > { %v1432_v18 = vsel %vm3347_vm2, %v1429_v9, 0.0  ;;  %v1442_v19 = vmul.f32 %v1429_v9, %v1429_v9  ;;  %v1438_v28 = vsel %vm3768_vm4, %v1434_v21, 0.0 }
 0x3f8   : > { %v1433_v20 = vsel %vm3351_vm3, %v1430_v17, 0.0  ;;  %v1443_v14 = vmul.f32 %v1430_v17, %v1430_v17  ;;  %v1435_v22 = vsel %vm3765_vm15, %v1432_v18, 0.0  ;;  %v1447_v13 = vsel %vm3355_vm9, %v1444_v16, 0.0  ;;  %vm3770_vm15 = vmmov %vm3768_vm4 }
 0x3f9   : > { %v1436_v23 = vsel %vm3766_vm12, %v1433_v20, 0.0  ;;  %v1445_v24 = vsel %vm3347_vm2, %v1442_v19, 0.0  ;;  %v1451_v34 = vsel %vm3770_vm15, %v1447_v13, 0.0  ;;  %vm3771_vm4 = vcmask 1041408  }
 0x3fa   : > { %v1437_v59 = vadd.f32 %v1436_v23, %v1435_v22  ;;  %v1446_v25 = vsel %vm3351_vm3, %v1443_v14, 0.0  ;;  %v1448_v26 = vsel %vm3767_vm11, %v1445_v24, 0.0  ;;  %vm3772_vm15 = vmmov %vm3771_vm4 }
 0x3fb   : > { %v1427_v27 = vpop.f32.mrf.mxu2  ;;  %v1449_v29 = vsel %vm3769_vm8, %v1446_v25, 0.0  ;;  %vm3773_vm9 = vmmov %vm3771_vm4 }
 0x3fc   : > { %v1401_v30 = vpop.f32.mrf.mxu0  ;;  %v1439_v31 = vadd.f32 %v1438_v28, %v1437_v59  ;;  %v1450_v32 = vadd.f32 %v1449_v29, %v1448_v26 }
 0x3fd   : > { %v1414_v33 = vpop.f32.mrf.mxu1 }
 0x3fe   : > { %1440 = vadd.xlane.f32.xlu0 %v1439_v31  ;;  %v1452_v35 = vadd.f32 %v1451_v34, %v1450_v32  ;;  %v1541_v34 = vld [vmem:[%s3690_s7] sm:$0x3] }
 0x400   : > { %1453 = vadd.xlane.f32.xlu1 %v1452_v35 }
 0x471   : > { %v1441_v36 = vpop.xlane.xlu0 %1440 }
 0x472   : > { %v1455_v37 = vmul.f32 0.00390625, %v1441_v36 }
 0x473   : > { %v1454_v40 = vpop.xlane.xlu1 %1453 }
 0x474   : > { %v1456_v42 = vmul.f32 0.00390625, %v1454_v40  ;;  %v1457_v44 = vmul.f32 %v1455_v37, %v1455_v37  ;;  %v1460_v57 = vsub.f32 %v1429_v9, %v1455_v37  ;;  %v1461_v52 = vsub.f32 %v1430_v17, %v1455_v37  ;;  %v1477_v9 = vld [vmem:[%s3689_s6] sm:$0xf] }
 0x475   : > { %v1462_v63 = vsub.f32 %v3345_v7, %v1455_v37  ;;  %v1485_v7 = vpop.permute.xlu2 %1484 }
 0x476   : > { %v1458_v47 = vsub.f32 %v1456_v42, %v1457_v44 }
 0x478   : > { %v1459_v43 = vmax.f32 %v1458_v47, 0.0 }
 0x47a   : > { %v1463_v49 = vadd.f32 1e-05, %v1459_v43 }
 0x47c   : > { %2915 = vrsqrt.f32 %v1463_v49  ;;  %vm1470_vm12 = vweird.f32 %v1463_v49 }
 0x47d   : > { %v1549_v47 = vpop.permute.xlu2 %1548 }
 0x482   : > { %v2916_v39 = vpop.eup %2915 }
 0x483   : > { %v1465_v41 = vmul.f32 %v2916_v39, %v1463_v49  ;;  %vm1471_vm8 = vweird.f32 %v2916_v39 }
 0x484   : > { %vm1472_vm11 = vmor %vm1470_vm12, %vm1471_vm8  ;;  %vm3774_vm8 = vcmask 31744  }
 0x485   : > { %v1466_v46 = vmul.f32 %v2916_v39, %v1465_v41  ;;  %vm3775_vm12 = vmmov %vm3774_vm8 }
 0x487   : > { %v1467_v38 = vmul.f32 0.5, %v1466_v46 }
 0x489   : > { %v1468_v55 = vsub.f32 1.5, %v1467_v38 }
 0x48b   : > { %v1469_v56 = vmul.f32 %v2916_v39, %v1468_v55 }
 0x48d   : > { %v1473_v0 = vsel %vm1472_vm11, %v2916_v39, %v1469_v56  ;;  %vm3776_vm11 = vmmov %vm3774_vm8 }
 0x48e   : > { %v1474_v11 = vmul.f32 %v1473_v0, %v1460_v57  ;;  %v1475_v16 = vmul.f32 %v1473_v0, %v1461_v52  ;;  %v1476_v18 = vmul.f32 %v1473_v0, %v1462_v63 }
 0x490   : > { %v1478_v19 = vpack.c.bf16 %v1474_v11, %v1474_v11  ;;  %v1479_v20 = vpack.c.bf16 %v1475_v16, %v1475_v16  ;;  %v1480_v14 = vpack.c.bf16 %v1476_v18, %v1476_v18 }
 0x492   : > { %v1491_v21 = vsel %vm3771_vm4, %v1478_v19, 0  ;;  %v1494_v22 = vsel %vm3772_vm15, %v1479_v20, 0  ;;  %v1497_v23 = vsel %vm3773_vm9, %v1480_v14, 0  ;;  %vm3777_vm9 = vcmask 1043456  }
 0x493   : > { %1506 = vmatpush.bf16.msra.mxu3 %v1491_v21  ;;  %1519 = vmatpush.bf16.msrb.mxu0 %v1494_v22  ;;  %vm3778_vm4 = vmmov %vm3777_vm9  ;;  %vm1551_vm15 = vcmask 64512  }
 0x494   : > { %1532 = vmatpush.bf16.msrb.mxu1 %v1497_v23 }
 0x496   : > { %2781 = vmatmul.msk.bf16.vlgmr.msra.gmra.mxu3 %vm3774_vm8, %v1477_v9  ;;  %2782 = vmatmul.msk.bf16.vlgmr.msrb.gmra.mxu0 %vm3775_vm12, %v1477_v9  ;;  %vm3779_vm8 = vmmov %vm3778_vm4  ;;  %vm3780_vm12 = vcmask 1041408  }
 0x497   : > { %2783 = vmatmul.msk.bf16.vlgmr.msrb.gmra.mxu1 %vm3776_vm11, %v1477_v9  ;;  %vm3781_vm11 = vcmask 1045508  }
 0x513   : > { %v1521_v17 = vpop.f32.mrf.mxu0 }
 0x514   : > { %v1522_v24 = vadd.f32 %v1521_v17, %v1485_v7  ;;  %v1534_v59 = vpop.f32.mrf.mxu1 }
 0x515   : > { %v1535_v25 = vadd.f32 %v1534_v59, %v1485_v7 }
 0x516   : > { %v1539_v13 = vmax.f32 %v1522_v24, 0.0 }
 0x517   : > { %v1540_v26 = vmax.f32 %v1535_v25, 0.0 }
 0x518   : > { %v1543_v27 = vpack.c.bf16 %v1539_v13, %v1539_v13 }
 0x519   : > { %v1544_v28 = vpack.c.bf16 %v1540_v26, %v1540_v26  ;;  %v1508_v29 = vpop.f32.mrf.mxu3 }
 0x51a   : > { %v1509_v30 = vadd.f32 %v1508_v29, %v1485_v7  ;;  %v1559_v31 = vsel %vm3777_vm9, %v1543_v27, 0  ;;  %vm3782_vm9 = vmmov %vm3778_vm4 }
 0x51b   : > { %v1523_v32 = vpop.f32.mrf.mxu0  ;;  %1584 = vmatpush.bf16.msrb.mxu3 %v1559_v31  ;;  %v1562_v33 = vsel %vm3778_vm4, %v1544_v28, 0  ;;  %vm3783_vm4 = vcmask 293888  }
 0x51c   : > { %v1538_v35 = vmax.f32 %v1509_v30, 0.0  ;;  %1597 = vmatpush.bf16.msra.mxu0 %v1562_v33  ;;  %v1536_v36 = vpop.f32.mrf.mxu1 }
 0x51e   : > { %v1542_v37 = vpack.c.bf16 %v1538_v35, %v1538_v35  ;;  %2785 = vmatmul.msk.bf16.vlgmr.msrb.gmra.mxu3 %vm1551_vm15, %v1541_v34 }
 0x51f   : > { %2786 = vmatmul.msk.bf16.vlgmr.msra.gmra.mxu0 %vm1551_vm15, %v1541_v34 }
 0x520   : > { %v1556_v40 = vsel %vm3779_vm8, %v1542_v37, 0  ;;  %vm3784_vm8 = vcmask 736256  }
 0x521   : > { %v1510_v42 = vpop.f32.mrf.mxu3  ;;  %1571 = vmatpush.bf16.msrb.mxu2 %v1556_v40 }
 0x524   : > { %2784 = vmatmul.msk.bf16.vlgmr.msrb.gmra.mxu2 %vm1551_vm15, %v1541_v34 }
 0x59c   : > { %v1599_v44 = vpop.f32.mrf.mxu0 }
 0x59d   : > { %v1600_v48 = vadd.f32 %v1599_v44, %v1549_v47 }
 0x59f   : > { %v3408_v49 = vmax.f32 %v1600_v48, 0.0 }
 0x5a1   : > { %v1586_v43 = vpop.f32.mrf.mxu3  ;;  %v1607_v46 = vpack.c.bf16 %v3408_v49, %v3408_v49 }
 0x5a2   : > { %v1587_v39 = vadd.f32 %v1586_v43, %v1549_v47 }
 0x5a3   : > { %v1611_v52 = vrot.slane %v1607_v46, 4  ;;  %v1612_v63 = vrot.slane %v1607_v46, 6 }
 0x5a4   : > { %v1601_v54 = vpop.f32.mrf.mxu0  ;;  %v1604_v56 = vmax.f32 %v1587_v39, 0.0 }
 0x5a5   : > { %v1618_v19 = vsel %vm3781_vm11, %v1611_v52, %v1612_v63  ;;  %vm3786_vm11 = vmmov %vm3784_vm8 }
 0x5a7   : > { %v1573_v41 = vpop.f32.mrf.mxu2 }
 0x5a8   : > { %v1574_v38 = vadd.f32 %v1573_v41, %v1549_v47 }
 0x5a9   : > { %v1588_v55 = vpop.f32.mrf.mxu3 }
 0x5aa   : > { %v1603_v57 = vmax.f32 %v1574_v38, 0.0 }
 0x5ac   : > { %v1606_v0 = vpack.c.bf16 %v1604_v56, %v1603_v57 }
 0x5ae   : > { %v1610_v11 = vrot.slane %v1606_v0, 2 }
 0x5af   : > { %v1575_v16 = vpop.f32.mrf.mxu2 }
 0x5b0   : > { %v1615_v18 = vsel %vm3780_vm12, %v1606_v0, %v1610_v11  ;;  %vm3785_vm12 = vmmov %vm3784_vm8 }
 0x5b1   : > { %v1619_v20 = vsel %vm3782_vm9, %v1615_v18, %v1618_v19  ;;  %vm3787_vm9 = vcmask 769024  }
 0x5b2   : > { %1621 = vrot.lane.b32.xlu2 %v1619_v20, %s2928_s14 }
 0x60c   : > { %v1622_v14 = vpop.permute.xlu2 %1621 }
 0x60d   : > { %v1623_v21 = vrot.slane %v1622_v14, 6 }
 0x60f   : > { %v1624_v22 = vsel %vm3783_vm4, %v1623_v21, %v1622_v14  ;;  %vm3788_vm4 = vmmov %vm3787_vm9 }
 0x610   : > { %1626 = vst.msk [vmem:[#allocation2] sm:$0xff] %vm3044_vm10, %v1624_v22 }
 0x617   : > { %v1627_v23 = vld [vmem:[#allocation2] sm:$0xff] }
 0x618   : > { %v1628_v9 = vunpack.c.l.bf16 %v1627_v23  ;;  %v1629_v7 = vunpack.c.h.bf16 %v1627_v23 }
 0x61a   : > { %1632 = vst [vmem:[#allocation1] ss:$2 sm:$0xff] %v1628_v9 }
 0x61b   : > { %1634 = vst [vmem:[#allocation1 + $0x10] ss:$2 sm:$0xff] %v1629_v7 }
 0x621   : > { %v1635_v17 = vld.sshfl [vmem:[#allocation1] sm:$0xff pattern:$0x75316420]  ;;  %v1636_v24 = vld.sshfl [vmem:[#allocation1 + $0x8] sm:$0xff pattern:$0x75316420] }
 0x622   : > { %v2884_v59 = vpack.i.bf16 %v1636_v24, %v1635_v17  ;;  %1661 = vst [vmem:[#allocation1] ss:$2 sm:$0xff] %v1628_v9  ;;  %v1637_v25 = vld.sshfl [vmem:[#allocation1 + $0x10] sm:$0xff pattern:$0x75316420] }
 0x623   : > { %v1638_v13 = vld.sshfl [vmem:[#allocation1 + $0x18] sm:$0xff pattern:$0x75316420] }
 0x624   : > { %2885 = vrot.lane.b32.xlu2 %v2884_v59, %s2929_s15  ;;  %1663 = vst [vmem:[#allocation1 + $0x10] ss:$2 sm:$0xff] %v1629_v7  ;;  %v2889_v26 = vpack.i.bf16 %v1638_v13, %v1637_v25 }
 0x629   : > { %v1664_v30 = vld.sshfl [vmem:[#allocation1] sm:$0xff pattern:$0x75316420]  ;;  %v1665_v31 = vld.sshfl [vmem:[#allocation1 + $0x8] sm:$0xff pattern:$0x75316420] }
 0x62a   : > { %v2894_v32 = vpack.i.bf16 %v1665_v31, %v1664_v30 }
 0x62b   : > { %v1666_v27 = vld.sshfl [vmem:[#allocation1 + $0x10] sm:$0xff pattern:$0x75316420]  ;;  %v1667_v28 = vld.sshfl [vmem:[#allocation1 + $0x18] sm:$0xff pattern:$0x75316420] }
 0x62c   : > { %v2899_v29 = vpack.i.bf16 %v1667_v28, %v1666_v27  ;;  %2890 = vrot.lane.b32.xlu2 %v2889_v26, %s2929_s15  ;;  %s3803_s15 = smov 75  }
 0x62e   : > { %2900 = vrot.lane.b32.xlu0 %v2899_v29, %s2930_s16 }
 0x634   : > { %2895 = vrot.lane.b32.xlu2 %v2894_v32, %s2930_s16  ;;  %s3804_s16 = smov 74  }
 0x67e   : > { %v2886_v33 = vpop.permute.xlu2 %2885 }
 0x67f   : > { %v2888_v36 = vunpack.i.h.bf16 %v2886_v33  ;;  %v2887_v37 = vunpack.i.l.bf16 %v2886_v33 }
 0x681   : > { %v1647_v48 = vsel %vm3784_vm8, %v2887_v37, %v2888_v36  ;;  %vm3789_vm8 = vmmov %vm3788_vm4 }
 0x682   : > { %v1653_v55 = vsel %vm3082_vm1, %v1647_v48, %v1603_v57  ;;  %vm3790_vm1 = vcmask 1041408  }
 0x686   : > { %v2891_v34 = vpop.permute.xlu2 %2890 }
 0x687   : > { %v2893_v40 = vunpack.i.h.bf16 %v2891_v34  ;;  %v2892_v42 = vunpack.i.l.bf16 %v2891_v34 }
 0x689   : > { %v1648_v43 = vsel %vm3785_vm12, %v2888_v36, %v2892_v42  ;;  %v1649_v54 = vsel %vm3786_vm11, %v2892_v42, %v2893_v40  ;;  %vm3797_vm11 = vnez %v3749_v58 }
 0x68a   : > { %v1654_v52 = vsel %vm3086_vm5, %v1648_v43, %v1604_v56  ;;  %v1655_v63 = vsel %vm3066_vm14, %v1649_v54, %v3408_v49  ;;  %vm3791_vm14 = vcmask 1045508   ;;  %vm3792_vm5 = vcmask 1043456  }
 0x68e   : > { %v2896_v35 = vpop.permute.xlu2 %2895 }
 0x68f   : > { %v2898_v44 = vunpack.i.h.bf16 %v2896_v35  ;;  %v2897_v47 = vunpack.i.l.bf16 %v2896_v35 }
 0x691   : > { %v1676_v41 = vsel %vm3787_vm9, %v2897_v47, %v2898_v44  ;;  %vm3798_vm9 = vnez %v3745_v51 }
 0x692   : > { %v1682_v16 = vsel %vm3092_vm6, %v1676_v41, %v1653_v55  ;;  %vm3793_vm6 = vcmask 293888  }
 0x6a0   : > { %v2901_v39 = vpop.permute.xlu0 %2900 }
 0x6a1   : > { %v2903_v46 = vunpack.i.h.bf16 %v2901_v39  ;;  %v2902_v38 = vunpack.i.l.bf16 %v2901_v39 }
 0x6a3   : > { %v1677_v0 = vsel %vm3788_vm4, %v2898_v44, %v2902_v38  ;;  %v1678_v11 = vsel %vm3789_vm8, %v2902_v38, %v2903_v46  ;;  %vm3799_vm4 = vnez %v3751_v62  ;;  %vm3800_vm8 = vnez %v3753_v4 }
 0x6a4   : > { %v1683_v18 = vsel %vm3096_vm7, %v1677_v0, %v1654_v52  ;;  %v1684_v60 = vsel %vm3071_vm0, %v1678_v11, %v1655_v63  ;;  %vm3794_vm0 = vcmask 457728  }
 0x6a5   : > { %v1686_v57 = vpack.c.bf16 %v1684_v60, %v1684_v60  ;;  %v1685_v61 = vpack.c.bf16 %v1683_v18, %v1682_v16  ;;  %vm3795_vm7 = vmmov %vm3794_vm0 }
 0x6a6   : > { %vm3796_vm12 = vmmov %vm3794_vm0 }
 0x6a7   : > { %v1689_v56 = vrot.slane %v1685_v61, 2  ;;  %v1690_v19 = vrot.slane %v1686_v57, 4  ;;  %v1691_v20 = vrot.slane %v1686_v57, 6 }
 0x6a9   : > { %v1694_v45 = vsel %vm3790_vm1, %v1685_v61, %v1689_v56  ;;  %v1697_v49 = vsel %vm3791_vm14, %v1690_v19, %v1691_v20 }
 0x6aa   : > { %v1698_v14 = vsel %vm3792_vm5, %v1694_v45, %v1697_v49 }
 0x6ab   : > { %1700 = vrot.lane.b32.xlu1 %v1698_v14, %s2928_s14 }
 0x71d   : > { %v1701_v3 = vpop.permute.xlu1 %1700 }
 0x71e   : > { %v1702_v21 = vrot.slane %v1701_v3, 6 }
 0x720   : > { %v1703_v5 = vsel %vm3793_vm6, %v1702_v21, %v1701_v3 }
 0x721   : > { %1705 = vst.msk [vmem:[#allocation2] sm:$0xff] %vm3044_vm10, %v1703_v5 }
 0x728   : > { %v1706_v50 = vld [vmem:[#allocation2] sm:$0xff] }
 0x729   : > { %v1707_v22 = vunpack.c.l.bf16 %v1706_v50  ;;  %v1708_v23 = vunpack.c.h.bf16 %v1706_v50  ;;  %v1735_v9 = vld [vmem:[#allocation2] sm:$0x3f] }
 0x72a   : > { %v1736_v7 = vunpack.c.l.bf16 %v1735_v9  ;;  %v1737_v59 = vunpack.c.h.bf16 %v1735_v9 }
 0x72b   : > { %1711 = vst [vmem:[#allocation1] ss:$2 sm:$0xff] %v1707_v22 }
 0x72c   : > { %1713 = vst [vmem:[#allocation1 + $0x10] ss:$2 sm:$0xff] %v1708_v23 }
 0x732   : > { %v1714_v17 = vld.sshfl [vmem:[#allocation1] sm:$0xff pattern:$0x75316420]  ;;  %v1715_v24 = vld.sshfl [vmem:[#allocation1 + $0x8] sm:$0xff pattern:$0x75316420] }
 0x733   : > { %v2904_v25 = vpack.i.bf16 %v1715_v24, %v1714_v17  ;;  %1740 = vst [vmem:[#allocation1] ss:$2 sm:$0xff] %v1736_v7  ;;  %v1716_v13 = vld.sshfl [vmem:[#allocation1 + $0x10] sm:$0xff pattern:$0x75316420] }
 0x734   : > { %v1717_v26 = vld.sshfl [vmem:[#allocation1 + $0x18] sm:$0xff pattern:$0x75316420] }
 0x735   : > { %2905 = vrot.lane.b32.xlu2 %v2904_v25, %s2931_s19  ;;  %1742 = vst [vmem:[#allocation1 + $0x10] ss:$2 sm:$0xff] %v1737_v59  ;;  %v2909_v27 = vpack.i.bf16 %v1717_v26, %v1716_v13 }
 0x73a   : > { %v1743_v40 = vld.sshfl [vmem:[#allocation1] sm:$0xff pattern:$0x75316420]  ;;  %v1744_v47 = vld.sshfl [vmem:[#allocation1 + $0x8] sm:$0xff pattern:$0x75316420] }
 0x73c   : > { %v1745_v48 = vld.sshfl [vmem:[#allocation1 + $0x10] sm:$0xff pattern:$0x75316420] }
 0x73d   : > { %2910 = vrot.lane.b32.xlu2 %v2909_v27, %s2931_s19  ;;  %s3805_s19 = smov 73  }
 0x78f   : > { %v2906_v28 = vpop.permute.xlu2 %2905 }
 0x790   : > { %v2908_v29 = vunpack.i.h.bf16 %v2906_v28  ;;  %v2907_v30 = vunpack.i.l.bf16 %v2906_v28 }
 0x792   : > { %v1726_v31 = vsel %vm3794_vm0, %v2907_v30, %v2908_v29  ;;  %vm3807_vm0 = vmmov %vm3790_vm1 }
 0x793   : > { %v1732_v35 = vsel %vm3140_vm13, %v1726_v31, %v1682_v16  ;;  %vm3801_vm13 = vnez %v3755_v6 }
 0x794   : > { %v1749_v43 = vsel %vm3799_vm4, %v1743_v40, %v1732_v35  ;;  %vm3812_vm4 = vmmov %vm3807_vm0 }
 0x797   : > { %v2911_v32 = vpop.permute.xlu2 %2910 }
 0x798   : > { %v2913_v33 = vunpack.i.h.bf16 %v2911_v32  ;;  %v2912_v34 = vunpack.i.l.bf16 %v2911_v32 }
 0x79a   : > { %v1727_v36 = vsel %vm3795_vm7, %v2908_v29, %v2912_v34  ;;  %v1728_v37 = vsel %vm3796_vm12, %v2912_v34, %v2913_v33  ;;  %vm3808_vm7 = vcmask 31744  }
 0x79b   : > { %v1733_v42 = vsel %vm3797_vm11, %v1727_v36, %v1683_v18  ;;  %v1734_v44 = vsel %vm3798_vm9, %v1728_v37, %v1684_v60  ;;  %v2787_v37 = vld [vmem:[%s3692_s9 + $0x2] sm:$0x3]  ;;  %vm3811_vm9 = vmmov %vm3807_vm0 }
 0x79c   : > { %v1750_v53 = vsel %vm3800_vm8, %v1744_v47, %v1733_v42  ;;  %v1751_v54 = vsel %vm3801_vm13, %v1745_v48, %v1734_v44  ;;  %vm3813_vm8 = vmmov %vm3808_vm7 }
 0x79d   : > { %v1752_v39 = vpack.c.bf16 %v1750_v53, %v1749_v43  ;;  %v1753_v41 = vpack.c.bf16 %v1751_v54, %v1751_v54  ;;  %vm3814_vm13 = vmmov %vm3808_vm7 }
 0x79f   : > { %v1756_v46 = vrot.slane %v1752_v39, 2  ;;  %v1757_v38 = vrot.slane %v1753_v41, 4  ;;  %v1758_v58 = vrot.slane %v1753_v41, 6 }
 0x7a1   : > { %v1761_v55 = vsel %vm3790_vm1, %v1752_v39, %v1756_v46  ;;  %v1764_v51 = vsel %vm3791_vm14, %v1757_v38, %v1758_v58  ;;  %vm3815_vm1 = vcmask 908288  }
 0x7a2   : > { %v1765_v52 = vsel %vm3792_vm5, %v1761_v55, %v1764_v51  ;;  %vm3816_vm14 = vmmov %vm3815_vm1 }
 0x7a3   : > { %1767 = vrot.lane.b32.xlu0 %v1765_v52, %s2928_s14  ;;  %s3802_s14 = smov 91   ;;  %vm3817_vm5 = vmmov %vm3807_vm0  ;;  %v1773_v52 = vld [vmem:[%s3692_s9] sm:$0x3] }
 0x815   : > { %v1768_v62 = vpop.permute.xlu0 %1767 }
 0x816   : > { %v1769_v63 = vrot.slane %v1768_v62, 6 }
 0x818   : > { %v1770_v4 = vsel %vm3793_vm6, %v1769_v63, %v1768_v62  ;;  %vm3818_vm6 = vmmov %vm3807_vm0 }
 0x819   : > { %1772 = vst.msk [vmem:[#allocation2] sm:$0xff] %vm3044_vm10, %v1770_v4  ;;  %vm3806_vm10 = vcmask 900096  }
 0x81a   : > { %vm3809_vm12 = vmmov %vm3806_vm10 }
 0x81b   : > { %vm3810_vm11 = vmmov %vm3806_vm10 }
 0x820   : > { %v3473_v6 = vld [vmem:[#allocation2] sm:$0xff] }
 0x821   : > { %1778 = vst [vmem:[#allocation1] ss:$4 sm:$0xff] %v3473_v6 }
 0x828   : > { %v1779_v0 = vld.sshfl [vmem:[#allocation1] sm:$0xff pattern:$0x73625140]  ;;  %v1781_v11 = vld.sshfl [vmem:[#allocation1 + $0x8] sm:$0xff pattern:$0x73625140] }
 0x829   : > { %v1783_v16 = vld.sshfl [vmem:[#allocation1 + $0x10] sm:$0xff pattern:$0x73625140]  ;;  %v1785_v18 = vld.sshfl [vmem:[#allocation1 + $0x18] sm:$0xff pattern:$0x73625140]  ;;  %1789 = vrot.lane.b32.xlu2 %v1781_v11, %s2932_s22 }
 0x82a   : > { %1849 = vst [vmem:[#allocation1] ss:$4 sm:$0xff] %v3473_v6  ;;  %1793 = vrot.lane.b32.xlu0 %v1785_v18, %s2932_s22  ;;  %1791 = vrot.lane.b32.xlu1 %v1783_v16, %s2932_s22  ;;  %v2794_v16 = vld [vmem:[%s3692_s9 + $0x4] sm:$0x3] }
 0x831   : > { %v1850_v60 = vld.sshfl [vmem:[#allocation1] sm:$0xff pattern:$0x73625140]  ;;  %v1852_v57 = vld.sshfl [vmem:[#allocation1 + $0x8] sm:$0xff pattern:$0x73625140]  ;;  %1787 = vrot.lane.b32.xlu2 %v1779_v0, %s2932_s22 }
 0x832   : > { %v1854_v15 = vld.sshfl [vmem:[#allocation1 + $0x10] sm:$0xff pattern:$0x73625140]  ;;  %v1856_v61 = vld.sshfl [vmem:[#allocation1 + $0x18] sm:$0xff pattern:$0x73625140] }
 0x833   : > { %1924 = vst [vmem:[#allocation1] ss:$4 sm:$0xff] %v3473_v6  ;;  %1864 = vrot.lane.b32.xlu0 %v1856_v61, %s2933_s23  ;;  %1862 = vrot.lane.b32.xlu1 %v1854_v15, %s2933_s23 }
 0x83a   : > { %v1925_v56 = vld.sshfl [vmem:[#allocation1] sm:$0xff pattern:$0x73625140]  ;;  %v1927_v19 = vld.sshfl [vmem:[#allocation1 + $0x8] sm:$0xff pattern:$0x73625140] }
 0x83b   : > { %v1929_v20 = vld.sshfl [vmem:[#allocation1 + $0x10] sm:$0xff pattern:$0x73625140]  ;;  %v1931_v45 = vld.sshfl [vmem:[#allocation1 + $0x18] sm:$0xff pattern:$0x73625140]  ;;  %1858 = vrot.lane.b32.xlu0 %v1850_v60, %s2933_s23  ;;  %1935 = vrot.lane.b32.xlu1 %v1927_v19, %s2934_s24 }
 0x83c   : > { %2002 = vst [vmem:[#allocation1] ss:$4 sm:$0xff] %v3473_v6  ;;  %1933 = vrot.lane.b32.xlu2 %v1925_v56, %s2934_s24 }
 0x843   : > { %v2003_v49 = vld.sshfl [vmem:[#allocation1] sm:$0xff pattern:$0x73625140]  ;;  %v2005_v14 = vld.sshfl [vmem:[#allocation1 + $0x8] sm:$0xff pattern:$0x73625140] }
 0x844   : > { %v2007_v3 = vld.sshfl [vmem:[#allocation1 + $0x10] sm:$0xff pattern:$0x73625140]  ;;  %v2009_v21 = vld.sshfl [vmem:[#allocation1 + $0x18] sm:$0xff pattern:$0x73625140]  ;;  %1860 = vrot.lane.b32.xlu2 %v1852_v57, %s2933_s23  ;;  %2013 = vrot.lane.b32.xlu0 %v2005_v14, %s2935_s28 }
 0x845   : > { %2080 = vst [vmem:[#allocation1] ss:$4 sm:$0xff] %v3473_v6  ;;  %2011 = vrot.lane.b32.xlu1 %v2003_v49, %s2935_s28 }
 0x84c   : > { %v2081_v5 = vld.sshfl [vmem:[#allocation1] sm:$0xff pattern:$0x73625140]  ;;  %v2083_v50 = vld.sshfl [vmem:[#allocation1 + $0x8] sm:$0xff pattern:$0x73625140]  ;;  %2015 = vrot.lane.b32.xlu2 %v2007_v3, %s2935_s28  ;;  %1939 = vrot.lane.b32.xlu0 %v1931_v45, %s2934_s24 }
 0x84d   : > { %v2085_v22 = vld.sshfl [vmem:[#allocation1 + $0x10] sm:$0xff pattern:$0x73625140]  ;;  %v2087_v23 = vld.sshfl [vmem:[#allocation1 + $0x18] sm:$0xff pattern:$0x73625140]  ;;  %1937 = vrot.lane.b32.xlu1 %v1929_v20, %s2934_s24 }
 0x84e   : > { %2158 = vst [vmem:[#allocation1] ss:$4 sm:$0xff] %v3473_v6 }
 0x854   : > { %2095 = vrot.lane.b32.xlu0 %v2087_v23, %s2936_s29  ;;  %2091 = vrot.lane.b32.xlu2 %v2083_v50, %s2936_s29 }
 0x855   : > { %v2159_v9 = vld.sshfl [vmem:[#allocation1] sm:$0xff pattern:$0x73625140]  ;;  %v2161_v7 = vld.sshfl [vmem:[#allocation1 + $0x8] sm:$0xff pattern:$0x73625140]  ;;  %2093 = vrot.lane.b32.xlu1 %v2085_v22, %s2936_s29 }
 0x856   : > { %v2163_v17 = vld.sshfl [vmem:[#allocation1 + $0x10] sm:$0xff pattern:$0x73625140]  ;;  %v2165_v24 = vld.sshfl [vmem:[#allocation1 + $0x18] sm:$0xff pattern:$0x73625140] }
 0x857   : > { %2236 = vst [vmem:[#allocation1] ss:$4 sm:$0xff] %v3473_v6 }
 0x85c   : > { %2017 = vrot.lane.b32.xlu2 %v2009_v21, %s2935_s28  ;;  %2171 = vrot.lane.b32.xlu0 %v2163_v17, %s3802_s14 }
 0x85d   : > { %2089 = vrot.lane.b32.xlu1 %v2081_v5, %s2936_s29  ;;  %v2798_v5 = vld [vmem:[%s3692_s9 + $0x6] sm:$0x3] }
 0x85e   : > { %v2237_v59 = vld.sshfl [vmem:[#allocation1] sm:$0xff pattern:$0x73625140]  ;;  %v2239_v25 = vld.sshfl [vmem:[#allocation1 + $0x8] sm:$0xff pattern:$0x73625140] }
 0x85f   : > { %v2241_v13 = vld.sshfl [vmem:[#allocation1 + $0x10] sm:$0xff pattern:$0x73625140]  ;;  %v2243_v26 = vld.sshfl [vmem:[#allocation1 + $0x18] sm:$0xff pattern:$0x73625140] }
 0x860   : > { %2314 = vst [vmem:[#allocation1] ss:$4 sm:$0xff] %v3473_v6 }
 0x864   : > { %2173 = vrot.lane.b32.xlu2 %v2165_v24, %s3802_s14  ;;  %2247 = vrot.lane.b32.xlu0 %v2239_v25, %s3803_s15 }
 0x865   : > { %2245 = vrot.lane.b32.xlu1 %v2237_v59, %s3803_s15 }
 0x867   : > { %v2321_v27 = vld.sshfl [vmem:[#allocation1 + $0x18] sm:$0xff pattern:$0x73625140]  ;;  %v2315_v28 = vld.sshfl [vmem:[#allocation1] sm:$0xff pattern:$0x73625140] }
 0x868   : > { %v2319_v29 = vld.sshfl [vmem:[#allocation1 + $0x10] sm:$0xff pattern:$0x73625140]  ;;  %v2317_v30 = vld.sshfl [vmem:[#allocation1 + $0x8] sm:$0xff pattern:$0x73625140] }
 0x869   : > { %2392 = vst [vmem:[#allocation1] ss:$4 sm:$0xff] %v3473_v6 }
 0x86c   : > { %2167 = vrot.lane.b32.xlu2 %v2159_v9, %s3802_s14  ;;  %2323 = vrot.lane.b32.xlu0 %v2315_v28, %s3804_s16 }
 0x86d   : > { %2169 = vrot.lane.b32.xlu1 %v2161_v7, %s3802_s14 }
 0x870   : > { %v2397_v31 = vld.sshfl [vmem:[#allocation1 + $0x10] sm:$0xff pattern:$0x73625140]  ;;  %v2395_v32 = vld.sshfl [vmem:[#allocation1 + $0x8] sm:$0xff pattern:$0x73625140] }
 0x871   : > { %v2399_v33 = vld.sshfl [vmem:[#allocation1 + $0x18] sm:$0xff pattern:$0x73625140]  ;;  %v2393_v34 = vld.sshfl [vmem:[#allocation1] sm:$0xff pattern:$0x73625140] }
 0x872   : > { %2641 = vst [vmem:[#allocation1 + $0x10] ss:$2 sm:$0xff] %v3034_v2 }
 0x873   : > { %2639 = vst [vmem:[#allocation1] ss:$2 sm:$0xff] %v3032_v1 }
 0x874   : > { %2325 = vrot.lane.b32.xlu2 %v2317_v30, %s3804_s16  ;;  %2249 = vrot.lane.b32.xlu0 %v2241_v13, %s3803_s15 }
 0x875   : > { %2327 = vrot.lane.b32.xlu1 %v2319_v29, %s3804_s16 }
 0x87c   : > { %2251 = vrot.lane.b32.xlu2 %v2243_v26, %s3803_s15  ;;  %2405 = vrot.lane.b32.xlu0 %v2397_v31, %s3805_s19 }
 0x87d   : > { %2403 = vrot.lane.b32.xlu1 %v2395_v32, %s3805_s19  ;;  %v2802_v32 = vld [vmem:[%s3692_s9 + $0x8] sm:$0x3] }
 0x883   : > { %v1790_v35 = vpop.permute.xlu2 %1789 }
 0x884   : > { %2407 = vrot.lane.b32.xlu2 %v2399_v33, %s3805_s19  ;;  %2401 = vrot.lane.b32.xlu0 %v2393_v34, %s3805_s19 }
 0x885   : > { %2329 = vrot.lane.b32.xlu1 %v2321_v27, %s3804_s16  ;;  %s3894_s16 = smul.u32 12, %s3897_s26 }
 0x887   : > { %s474_s23 = scalar_lea.vmem %s3696_s13, %s3894_s16 }
 0x88b   : > { %v1788_v1 = vpop.permute.xlu2 %1787 }
 0x88c   : > { %v1795_v2 = vsel %vm3806_vm10, %v1788_v1, %v1790_v35  ;;  %vm3819_vm10 = vmmov %vm3808_vm7 }
 0x88d   : > { %v1802_v36 = vsel %vm3807_vm0, %v1795_v2, 0  ;;  %vm3820_vm0 = vmmov %vm3815_vm1 }
 0x88e   : > { %1817 = vmatpush.bf16.msra.mxu1 %v1802_v36 }
 0x891   : > { %2788 = vmatmul.msk.bf16.vlgmr.msra.gmra.mxu1 %vm3808_vm7, %v2787_v37  ;;  %vm3821_vm7 = vcmask 891904  }
 0x896   : > { %v1934_v40 = vpop.permute.xlu2 %1933 }
 0x89c   : > { %v1794_v42 = vpop.permute.xlu0 %1793  ;;  %v1792_v44 = vpop.permute.xlu1 %1791 }
 0x89d   : > { %v1796_v47 = vsel %vm3809_vm12, %v1790_v35, %v1792_v44  ;;  %v1797_v48 = vsel %vm3810_vm11, %v1792_v44, %v1794_v42  ;;  %vm3822_vm12 = vmmov %vm3812_vm4 }
 0x89e   : > { %v1805_v43 = vsel %vm3811_vm9, %v1796_v47, 0  ;;  %v1808_v53 = vsel %vm3812_vm4, %v1797_v48, 0  ;;  %v1861_v54 = vpop.permute.xlu2 %1860  ;;  %vm3823_vm11 = vmmov %vm3812_vm4 }
 0x89f   : > { %1830 = vmatpush.bf16.msra.mxu2 %v1805_v43  ;;  %1843 = vmatpush.bf16.msra.mxu3 %v1808_v53  ;;  %vm3824_vm9 = vmmov %vm3813_vm8  ;;  %v2806_v43 = vld [vmem:[%s3692_s9 + $0xa] sm:$0x3] }
 0x8a0   : > { %vm3825_vm4 = vmmov %vm3813_vm8 }
 0x8a2   : > { %2789 = vmatmul.msk.bf16.vlgmr.msra.gmra.mxu2 %vm3813_vm8, %v2787_v37  ;;  %2790 = vmatmul.msk.bf16.vlgmr.msra.gmra.mxu3 %vm3814_vm13, %v2787_v37  ;;  %vm3826_vm8 = vmmov %vm3825_vm4  ;;  %vm3827_vm13 = vcmask 760832  }
 0x8a5   : > { %v1865_v39 = vpop.permute.xlu0 %1864  ;;  %v1863_v41 = vpop.permute.xlu1 %1862 }
 0x8a6   : > { %v1867_v46 = vsel %vm3815_vm1, %v1861_v54, %v1863_v41  ;;  %v1868_v38 = vsel %vm3816_vm14, %v1863_v41, %v1865_v39  ;;  %v2016_v51 = vpop.permute.xlu2 %2015  ;;  %vm3828_vm1 = vmmov %vm3817_vm5  ;;  %v2810_v39 = vld [vmem:[%s3692_s9 + $0xc] sm:$0x3] }
 0x8a7   : > { %v1876_v58 = vsel %vm3817_vm5, %v1867_v46, 0  ;;  %v1879_v55 = vsel %vm3818_vm6, %v1868_v38, 0  ;;  %vm3829_vm14 = vmmov %vm3827_vm13 }
 0x8a8   : > { %1901 = vmatpush.bf16.msrb.mxu1 %v1876_v58  ;;  %1914 = vmatpush.bf16.msrb.mxu2 %v1879_v55  ;;  %vm3830_vm5 = vmmov %vm3828_vm1 }
 0x8a9   : > { %vm3831_vm6 = vmmov %vm3827_vm13 }
 0x8ab   : > { %2792 = vmatmul.msk.bf16.vlgmr.msrb.gmra.mxu1 %vm3819_vm10, %v1773_v52  ;;  %vm3832_vm10 = vmmov %vm3821_vm7 }
 0x8ad   : > { %v1859_v62 = vpop.permute.xlu0 %1858  ;;  %v1936_v63 = vpop.permute.xlu1 %1935 }
 0x8ae   : > { %v1866_v4 = vsel %vm3820_vm0, %v1859_v62, %v1861_v54  ;;  %v1941_v6 = vsel %vm3821_vm7, %v1934_v40, %v1936_v63  ;;  %v2092_v18 = vpop.permute.xlu2 %2091  ;;  %vm3833_vm0 = vmmov %vm3821_vm7 }
 0x8af   : > { %v1873_v0 = vsel %vm3822_vm12, %v1866_v4, 0  ;;  %v1948_v11 = vsel %vm3823_vm11, %v1941_v6, 0  ;;  %vm3834_vm7 = vmmov %vm3828_vm1 }
 0x8b0   : > { %1888 = vmatpush.bf16.msrb.mxu0 %v1873_v0  ;;  %1963 = vmatpush.bf16.msrb.mxu3 %v1948_v11  ;;  %vm3835_vm12 = vmmov %vm3828_vm1 }
 0x8b1   : > { %vm3836_vm11 = vmmov %vm3828_vm1 }
 0x8b2   : > { %2793 = vmatmul.msk.bf16.vlgmr.msrb.gmra.mxu2 %vm3824_vm9, %v1773_v52  ;;  %vm3837_vm9 = vmmov %vm3825_vm4 }
 0x8b3   : > { %2791 = vmatmul.msk.bf16.vlgmr.msrb.gmra.mxu0 %vm3825_vm4, %v1773_v52  ;;  %2795 = vmatmul.msk.bf16.vlgmr.msrb.gmra.mxu3 %vm3826_vm8, %v2794_v16  ;;  %vm3838_vm8 = vmmov %vm3825_vm4 }
 0x8b6   : > { %v2014_v60 = vpop.permute.xlu0 %2013  ;;  %v2018_v20 = vpop.permute.xlu2 %2017 }
 0x8b7   : > { %v2020_v57 = vsel %vm3827_vm13, %v2014_v60, %v2016_v51  ;;  %v2012_v15 = vpop.permute.xlu1 %2011  ;;  %v2021_v49 = vsel %vm3831_vm6, %v2016_v51, %v2018_v20  ;;  %vm3839_vm13 = vmmov %vm3825_vm4 }
 0x8b8   : > { %v2029_v61 = vsel %vm3828_vm1, %v2020_v57, 0  ;;  %v2019_v56 = vsel %vm3829_vm14, %v2012_v15, %v2014_v60  ;;  %v2032_v23 = vsel %vm3836_vm11, %v2021_v49, 0  ;;  %vm3840_vm1 = vcmask 752640   ;;  %vm3842_vm6 = vmmov %vm3830_vm5  ;;  %v2814_v60 = vld [vmem:[%s3692_s9 + $0xe] sm:$0x3] }
 0x8b9   : > { %v2026_v19 = vsel %vm3830_vm5, %v2019_v56, 0  ;;  %2054 = vmatpush.bf16.msra.mxu3 %v2029_v61  ;;  %vm3841_vm14 = vmmov %vm3840_vm1  ;;  %v2818_v49 = vld [vmem:[%s3692_s9 + $0x10] sm:$0x3] }
 0x8ba   : > { %2041 = vmatpush.bf16.msra.mxu2 %v2026_v19  ;;  %vm3847_vm11 = vmmov %vm3825_vm4 }
 0x8be   : > { %v1940_v45 = vpop.permute.xlu0 %1939  ;;  %v2174_v9 = vpop.permute.xlu2 %2173 }
 0x8bf   : > { %v1938_v14 = vpop.permute.xlu1 %1937 }
 0x8c0   : > { %v1942_v3 = vsel %vm3832_vm10, %v1936_v63, %v1938_v14  ;;  %v1943_v21 = vsel %vm3833_vm0, %v1938_v14, %v1940_v45  ;;  %vm3843_vm10 = vcmask 744448   ;;  %vm3844_vm0 = vmmov %vm3840_vm1 }
 0x8c1   : > { %v1951_v50 = vsel %vm3834_vm7, %v1942_v3, 0  ;;  %v1954_v22 = vsel %vm3835_vm12, %v1943_v21, 0  ;;  %vm3845_vm7 = vmmov %vm3830_vm5 }
 0x8c2   : > { %1976 = vmatpush.bf16.msra.mxu0 %v1951_v50  ;;  %1989 = vmatpush.bf16.msra.mxu1 %v1954_v22  ;;  %vm3846_vm12 = vmmov %vm3830_vm5 }
 0x8c3   : > { %2799 = vmatmul.msk.bf16.vlgmr.msra.gmra.mxu2 %vm3837_vm9, %v2798_v5  ;;  %2800 = vmatmul.msk.bf16.vlgmr.msra.gmra.mxu3 %vm3825_vm4, %v2798_v5  ;;  %vm3848_vm9 = vmmov %vm3825_vm4 }
 0x8c5   : > { %2796 = vmatmul.msk.bf16.vlgmr.msra.gmra.mxu0 %vm3838_vm8, %v2794_v16  ;;  %2797 = vmatmul.msk.bf16.vlgmr.msra.gmra.mxu1 %vm3839_vm13, %v2794_v16  ;;  %vm3849_vm8 = vmmov %vm3825_vm4  ;;  %vm3850_vm13 = vcmask 613376  }
 0x8c6   : > { %2067 = vmatpush.bf16.msrb.mxu0 %v2032_v23  ;;  %v2096_v7 = vpop.permute.xlu0 %2095  ;;  %v2168_v29 = vpop.permute.xlu2 %2167 }
 0x8c7   : > { %v2094_v17 = vpop.permute.xlu1 %2093 }
 0x8c8   : > { %v2098_v24 = vsel %vm3840_vm1, %v2092_v18, %v2094_v17  ;;  %v2099_v59 = vsel %vm3841_vm14, %v2094_v17, %v2096_v7  ;;  %vm3851_vm1 = vmmov %vm3830_vm5  ;;  %vm3852_vm14 = vcmask 605184  }
 0x8c9   : > { %v2107_v25 = vsel %vm3830_vm5, %v2098_v24, 0  ;;  %v2110_v13 = vsel %vm3842_vm6, %v2099_v59, 0  ;;  %vm3853_vm5 = vmmov %vm3843_vm10 }
 0x8ca   : > { %2132 = vmatpush.bf16.msrb.mxu2 %v2107_v25  ;;  %2145 = vmatpush.bf16.msrb.mxu3 %v2110_v13  ;;  %vm3854_vm6 = vmmov %vm3853_vm5 }
 0x8ce   : > { %v2172_v26 = vpop.permute.xlu0 %2171  ;;  %v2326_v36 = vpop.permute.xlu2 %2325 }
 0x8cf   : > { %v2090_v27 = vpop.permute.xlu1 %2089  ;;  %v2177_v28 = vsel %vm3843_vm10, %v2172_v26, %v2174_v9  ;;  %vm3855_vm10 = vmmov %vm3851_vm1 }
 0x8d0   : > { %v2097_v30 = vsel %vm3844_vm0, %v2090_v27, %v2092_v18  ;;  %v2188_v31 = vsel %vm3845_vm7, %v2177_v28, 0  ;;  %vm3856_vm0 = vmmov %vm3851_vm1 }
 0x8d1   : > { %v2104_v33 = vsel %vm3846_vm12, %v2097_v30, 0  ;;  %2223 = vmatpush.bf16.msra.mxu2 %v2188_v31  ;;  %vm3857_vm7 = vmmov %vm3856_vm0 }
 0x8d2   : > { %2119 = vmatpush.bf16.msrb.mxu1 %v2104_v33  ;;  %vm3858_vm12 = vmmov %vm3825_vm4 }
 0x8d3   : > { %2804 = vmatmul.msk.bf16.vlgmr.msrb.gmra.mxu2 %vm3847_vm11, %v2802_v32  ;;  %2805 = vmatmul.msk.bf16.vlgmr.msrb.gmra.mxu3 %vm3848_vm9, %v2802_v32  ;;  %vm3859_vm11 = vmmov %vm3825_vm4 }
 0x8d4   : > { %vm3860_vm9 = vmmov %vm3825_vm4 }
 0x8d5   : > { %2801 = vmatmul.msk.bf16.vlgmr.msrb.gmra.mxu0 %vm3825_vm4, %v2798_v5  ;;  %2803 = vmatmul.msk.bf16.vlgmr.msrb.gmra.mxu1 %vm3849_vm8, %v2802_v32  ;;  %vm3861_vm8 = vmmov %vm3850_vm13 }
 0x8d6   : > { %v2248_v34 = vpop.permute.xlu0 %2247  ;;  %v2252_v41 = vpop.permute.xlu2 %2251 }
 0x8d7   : > { %v2246_v35 = vpop.permute.xlu1 %2245 }
 0x8d8   : > { %v2253_v1 = vsel %vm3850_vm13, %v2246_v35, %v2248_v34  ;;  %vm3862_vm13 = vmmov %vm3861_vm8 }
 0x8d9   : > { %v2260_v2 = vsel %vm3851_vm1, %v2253_v1, 0  ;;  %vm3863_vm1 = vmmov %vm3852_vm14 }
 0x8da   : > { %2275 = vmatpush.bf16.msra.mxu3 %v2260_v2 }
 0x8de   : > { %v2324_v37 = vpop.permute.xlu0 %2323  ;;  %v2408_v4 = vpop.permute.xlu2 %2407 }
 0x8df   : > { %v2170_v40 = vpop.permute.xlu1 %2169  ;;  %v2331_v42 = vsel %vm3852_vm14, %v2324_v37, %v2326_v36  ;;  %vm3864_vm14 = vmmov %vm3856_vm0 }
 0x8e0   : > { %v2175_v44 = vsel %vm3853_vm5, %v2168_v29, %v2170_v40  ;;  %v2176_v47 = vsel %vm3854_vm6, %v2170_v40, %v2172_v26  ;;  %v2338_v48 = vsel %vm3855_vm10, %v2331_v42, 0  ;;  %vm3865_vm5 = vmmov %vm3856_vm0  ;;  %vm3867_vm10 = vcmask 596992  }
 0x8e1   : > { %v2182_v53 = vsel %vm3856_vm0, %v2175_v44, 0  ;;  %v2185_v54 = vsel %vm3857_vm7, %v2176_v47, 0  ;;  %2353 = vmatpush.bf16.msrb.mxu2 %v2338_v48  ;;  %vm3866_vm6 = vmmov %vm3856_vm0 }
 0x8e2   : > { %2197 = vmatpush.bf16.msra.mxu0 %v2182_v53  ;;  %2210 = vmatpush.bf16.msra.mxu1 %v2185_v54  ;;  %vm3868_vm7 = vmmov %vm3867_vm10 }
 0x8e3   : > { %2809 = vmatmul.msk.bf16.vlgmr.msra.gmra.mxu2 %vm3858_vm12, %v2806_v43  ;;  %2811 = vmatmul.msk.bf16.vlgmr.msra.gmra.mxu3 %vm3859_vm11, %v2810_v39  ;;  %vm3869_vm12 = vmmov %vm3856_vm0 }
 0x8e4   : > { %vm3870_vm11 = vmmov %vm3825_vm4 }
 0x8e5   : > { %2807 = vmatmul.msk.bf16.vlgmr.msra.gmra.mxu0 %vm3860_vm9, %v2806_v43  ;;  %2808 = vmatmul.msk.bf16.vlgmr.msra.gmra.mxu1 %vm3825_vm4, %v2806_v43  ;;  %vm3871_vm9 = vmmov %vm3825_vm4 }
 0x8e6   : > { %v2250_v46 = vpop.permute.xlu0 %2249 }
 0x8e7   : > { %v2328_v38 = vpop.permute.xlu1 %2327  ;;  %v2254_v58 = vsel %vm3861_vm8, %v2248_v34, %v2250_v46  ;;  %v2255_v55 = vsel %vm3862_vm13, %v2250_v46, %v2252_v41  ;;  %vm3872_vm8 = vmmov %vm3825_vm4 }
 0x8e8   : > { %v2332_v51 = vsel %vm3863_vm1, %v2326_v36, %v2328_v38  ;;  %v2263_v52 = vsel %vm3864_vm14, %v2254_v58, 0  ;;  %v2266_v62 = vsel %vm3865_vm5, %v2255_v55, 0  ;;  %vm3873_vm13 = vmmov %vm3868_vm7 }
 0x8e9   : > { %v2341_v63 = vsel %vm3866_vm6, %v2332_v51, 0  ;;  %2288 = vmatpush.bf16.msrb.mxu0 %v2263_v52  ;;  %2301 = vmatpush.bf16.msrb.mxu1 %v2266_v62  ;;  %vm3874_vm14 = vmmov %vm3856_vm0 }
 0x8ea   : > { %2366 = vmatpush.bf16.msrb.mxu3 %v2341_v63  ;;  %vm3875_vm5 = vmmov %vm3856_vm0 }
 0x8eb   : > { %vm3876_vm6 = vmmov %vm3825_vm4 }
 0x8ee   : > { %v2406_v6 = vpop.permute.xlu0 %2405 }
 0x8ef   : > { %v2411_v0 = vsel %vm3867_vm10, %v2406_v6, %v2408_v4  ;;  %v2404_v11 = vpop.permute.xlu1 %2403  ;;  %vm3877_vm10 = vmmov %vm3825_vm4 }
 0x8f0   : > { %v2422_v16 = vsel %vm3856_vm0, %v2411_v0, 0  ;;  %v2410_v18 = vsel %vm3868_vm7, %v2404_v11, %v2406_v6  ;;  %vm3878_vm0 = vmmov %vm3825_vm4 }
 0x8f1   : > { %v2419_v57 = vsel %vm3869_vm12, %v2410_v18, 0  ;;  %2457 = vmatpush.bf16.msra.mxu3 %v2422_v16  ;;  %vm3879_vm7 = vmmov %vm3878_vm0  ;;  %vm3880_vm12 = vnez %v3764_v12 }
 0x8f2   : > { %2444 = vmatpush.bf16.msra.mxu2 %v2419_v57 }
 0x8f3   : > { %2815 = vmatmul.msk.bf16.vlgmr.msrb.gmra.mxu2 %vm3870_vm11, %v2814_v60  ;;  %2816 = vmatmul.msk.bf16.vlgmr.msrb.gmra.mxu3 %vm3871_vm9, %v2814_v60  ;;  %vm3881_vm11 = vcmask 1043456  }
 0x8f4   : > { %vm3882_vm9 = vmmov %vm3881_vm11 }
 0x8f5   : > { %2812 = vmatmul.msk.bf16.vlgmr.msrb.gmra.mxu0 %vm3825_vm4, %v2810_v39  ;;  %2813 = vmatmul.msk.bf16.vlgmr.msrb.gmra.mxu1 %vm3872_vm8, %v2810_v39  ;;  %vm3883_vm4 = vmmov %vm3882_vm9 }
 0x8f6   : > { %v2402_v15 = vpop.permute.xlu0 %2401 }
 0x8f7   : > { %v2330_v61 = vpop.permute.xlu1 %2329  ;;  %v2409_v56 = vsel %vm3873_vm13, %v2402_v15, %v2404_v11 }
 0x8f8   : > { %v2333_v19 = vsel %vm3863_vm1, %v2328_v38, %v2330_v61  ;;  %v2416_v20 = vsel %vm3874_vm14, %v2409_v56, 0 }
 0x8f9   : > { %v2344_v45 = vsel %vm3875_vm5, %v2333_v19, 0  ;;  %2431 = vmatpush.bf16.msra.mxu1 %v2416_v20 }
 0x8fa   : > { %2379 = vmatpush.bf16.msra.mxu0 %v2344_v45 }
 0x903   : > { %2820 = vmatmul.msk.bf16.vlgmr.msra.gmra.mxu2 %vm3876_vm6, %v2818_v49  ;;  %2821 = vmatmul.msk.bf16.vlgmr.msra.gmra.mxu3 %vm3877_vm10, %v2818_v49  ;;  %vm3887_vm6 = vmmov %vm3875_vm5 }
 0x904   : > { %vm3888_vm10 = vmmov %vm3875_vm5 }
 0x905   : > { %2817 = vmatmul.msk.bf16.vlgmr.msra.gmra.mxu0 %vm3878_vm0, %v2814_v60  ;;  %2819 = vmatmul.msk.bf16.vlgmr.msra.gmra.mxu1 %vm3879_vm7, %v2818_v49  ;;  %vm3889_vm7 = vmmov %vm3878_vm0 }
 0x90e   : > { %v1819_v14 = vpop.f32.mrf.mxu1 }
 0x916   : > { %v1821_v3 = vpop.f32.mrf.mxu1 }
 0x925   : > { %v1832_v21 = vpop.f32.mrf.mxu2  ;;  %v1845_v5 = vpop.f32.mrf.mxu3 }
 0x928   : > { %v1903_v50 = vpop.f32.mrf.mxu1 }
 0x929   : > { %v1904_v22 = vadd.f32 %v1903_v50, %v1832_v21 }
 0x92d   : > { %v1834_v23 = vpop.f32.mrf.mxu2  ;;  %v1847_v9 = vpop.f32.mrf.mxu3 }
 0x930   : > { %v1890_v7 = vpop.f32.mrf.mxu0  ;;  %v1905_v17 = vpop.f32.mrf.mxu1 }
 0x931   : > { %v1891_v24 = vadd.f32 %v1890_v7, %v1819_v14 }
 0x935   : > { %v1916_v59 = vpop.f32.mrf.mxu2 }
 0x936   : > { %v1917_v25 = vadd.f32 %v1916_v59, %v1845_v5  ;;  %v1965_v13 = vpop.f32.mrf.mxu3 }
 0x937   : > { %v1995_v26 = vadd.f32 %v1965_v13, %v1891_v24 }
 0x938   : > { %v1892_v27 = vpop.f32.mrf.mxu0 }
 0x93d   : > { %v1918_v28 = vpop.f32.mrf.mxu2 }
 0x93e   : > { %v1967_v29 = vpop.f32.mrf.mxu3 }
 0x942   : > { %v1978_v30 = vpop.f32.mrf.mxu0  ;;  %v1991_v31 = vpop.f32.mrf.mxu1 }
 0x943   : > { %v1996_v11 = vadd.f32 %v1978_v30, %v1904_v22  ;;  %v1997_v18 = vadd.f32 %v1991_v31, %v1917_v25 }
 0x946   : > { %v2043_v32 = vpop.f32.mrf.mxu2  ;;  %v2056_v33 = vpop.f32.mrf.mxu3 }
 0x947   : > { %v2073_v4 = vadd.f32 %v2043_v32, %v1995_v26  ;;  %v2074_v60 = vadd.f32 %v2056_v33, %v1996_v11 }
 0x94a   : > { %v1980_v34 = vpop.f32.mrf.mxu0  ;;  %v1993_v35 = vpop.f32.mrf.mxu1 }
 0x94e   : > { %v2045_v1 = vpop.f32.mrf.mxu2  ;;  %v2058_v2 = vpop.f32.mrf.mxu3 }
 0x952   : > { %v2069_v36 = vpop.f32.mrf.mxu0  ;;  %v2121_v37 = vpop.f32.mrf.mxu1 }
 0x953   : > { %v2151_v16 = vadd.f32 %v2121_v37, %v2073_v4  ;;  %v2075_v15 = vadd.f32 %v2069_v36, %v1997_v18 }
 0x956   : > { %v2134_v40 = vpop.f32.mrf.mxu2  ;;  %v2147_v42 = vpop.f32.mrf.mxu3 }
 0x957   : > { %v2152_v56 = vadd.f32 %v2134_v40, %v2074_v60  ;;  %v2153_v45 = vadd.f32 %v2147_v42, %v2075_v15 }
 0x95a   : > { %v2071_v44 = vpop.f32.mrf.mxu0  ;;  %v2123_v47 = vpop.f32.mrf.mxu1 }
 0x95e   : > { %v2136_v48 = vpop.f32.mrf.mxu2  ;;  %v2149_v43 = vpop.f32.mrf.mxu3 }
 0x962   : > { %v2199_v53 = vpop.f32.mrf.mxu0  ;;  %v2212_v54 = vpop.f32.mrf.mxu1 }
 0x963   : > { %v2229_v57 = vadd.f32 %v2199_v53, %v2151_v16  ;;  %v2230_v49 = vadd.f32 %v2212_v54, %v2152_v56 }
 0x966   : > { %v2225_v39 = vpop.f32.mrf.mxu2  ;;  %v2277_v41 = vpop.f32.mrf.mxu3 }
 0x967   : > { %v2307_v19 = vadd.f32 %v2277_v41, %v2229_v57  ;;  %v2231_v3 = vadd.f32 %v2225_v39, %v2153_v45 }
 0x96a   : > { %v2201_v46 = vpop.f32.mrf.mxu0  ;;  %v2214_v38 = vpop.f32.mrf.mxu1 }
 0x96b   : > { %v2515_v38 = vld [vmem:[%s469_s30] sm:$0xff] }
 0x96c   : > { %2518 = vperm.xlu0 %2914, %v2515_v38  }
 0x96e   : > { %v2227_v58 = vpop.f32.mrf.mxu2  ;;  %v2279_v55 = vpop.f32.mrf.mxu3 }
 0x972   : > { %v2290_v51 = vpop.f32.mrf.mxu0  ;;  %v2303_v52 = vpop.f32.mrf.mxu1 }
 0x973   : > { %v2308_v50 = vadd.f32 %v2290_v51, %v2230_v49  ;;  %v2309_v9 = vadd.f32 %v2303_v52, %v2231_v3  ;;  %v2579_v51 = vld [vmem:[%s3695_s12] sm:$0xf] }
 0x974   : > { %2582 = vperm.xlu0 %2914, %v2579_v51   ;;  %v2511_v3 = vld [vmem:[%s3693_s10] sm:$0xf] }
 0x976   : > { %v2355_v62 = vpop.f32.mrf.mxu2  ;;  %v2368_v63 = vpop.f32.mrf.mxu3 }
 0x977   : > { %v2385_v14 = vadd.f32 %v2355_v62, %v2307_v19  ;;  %v2386_v7 = vadd.f32 %v2368_v63, %v2308_v50 }
 0x97a   : > { %v2292_v6 = vpop.f32.mrf.mxu0  ;;  %v2305_v0 = vpop.f32.mrf.mxu1 }
 0x97e   : > { %v2357_v61 = vpop.f32.mrf.mxu2  ;;  %v2370_v20 = vpop.f32.mrf.mxu3 }
 0x982   : > { %v2381_v21 = vpop.f32.mrf.mxu0  ;;  %v2433_v5 = vpop.f32.mrf.mxu1 }
 0x983   : > { %v2463_v23 = vadd.f32 %v2433_v5, %v2385_v14  ;;  %v2387_v17 = vadd.f32 %v2381_v21, %v2309_v9 }
 0x985   : > { %v2476_v22 = vmul.f32 %v2463_v23, %v2463_v23  ;;  %v2466_v59 = vsel %vm3347_vm2, %v2463_v23, 0.0 }
 0x986   : > { %v2446_v24 = vpop.f32.mrf.mxu2  ;;  %v2459_v13 = vpop.f32.mrf.mxu3  ;;  %v2469_v34 = vsel %vm3881_vm11, %v2466_v59, 0.0 }
 0x987   : > { %v2464_v25 = vadd.f32 %v2446_v24, %v2386_v7  ;;  %v2465_v26 = vadd.f32 %v2459_v13, %v2387_v17  ;;  %v2479_v29 = vsel %vm3347_vm2, %v2476_v22, 0.0  ;;  %vm3884_vm2 = vmmov %vm3883_vm4 }
 0x988   : > { %v2482_v37 = vsel %vm3884_vm2, %v2479_v29, 0.0  ;;  %vm3885_vm8 = vmmov %vm3884_vm2  ;;  %v2575_v29 = vld [vmem:[%s3694_s11] sm:$0x3] }
 0x989   : > { %v2467_v27 = vsel %vm3351_vm3, %v2464_v25, 0.0  ;;  %v2477_v28 = vmul.f32 %v2464_v25, %v2464_v25  ;;  %v2478_v30 = vmul.f32 %v2465_v26, %v2465_v26  ;;  %v2468_v33 = vsel %vm3880_vm12, %v2465_v26, 0.0  ;;  %vm3886_vm13 = vmmov %vm3884_vm2 }
 0x98a   : > { %v2383_v31 = vpop.f32.mrf.mxu0  ;;  %v2435_v32 = vpop.f32.mrf.mxu1  ;;  %v2470_v35 = vsel %vm3882_vm9, %v2467_v27, 0.0  ;;  %v2472_v36 = vsel %vm3883_vm4, %v2468_v33, 0.0  ;;  %vm3891_vm11 = vmmov %vm3884_vm2 }
 0x98b   : > { %v2471_v1 = vadd.f32 %v2470_v35, %v2469_v34  ;;  %v2480_v2 = vsel %vm3351_vm3, %v2477_v28, 0.0  ;;  %v2481_v8 = vsel %vm3880_vm12, %v2478_v30, 0.0  ;;  %vm3890_vm12 = vmmov %vm3878_vm0 }
 0x98c   : > { %v2483_v40 = vsel %vm3885_vm8, %v2480_v2, 0.0  ;;  %v2485_v48 = vsel %vm3886_vm13, %v2481_v8, 0.0  ;;  %vm3892_vm9 = vmmov %vm3884_vm2 }
 0x98d   : > { %v2473_v42 = vadd.f32 %v2472_v36, %v2471_v1  ;;  %v2484_v44 = vadd.f32 %v2483_v40, %v2482_v37  ;;  %vm3893_vm4 = vmmov %vm3884_vm2  ;;  %v2643_v36 = vld.sshfl [vmem:[#allocation1 + $0x8] sm:$0xff pattern:$0x75316420] }
 0x98e   : > { %v2448_v47 = vpop.f32.mrf.mxu2  ;;  %v2461_v43 = vpop.f32.mrf.mxu3 }
 0x98f   : > { %2474 = vadd.xlane.f32.xlu2 %v2473_v42  ;;  %v2486_v53 = vadd.f32 %v2485_v48, %v2484_v44  ;;  %v2642_v44 = vld.sshfl [vmem:[#allocation1] sm:$0xff pattern:$0x75316420] }
 0x991   : > { %2487 = vadd.xlane.f32.xlu1 %v2486_v53  ;;  %v2644_v53 = vld.sshfl [vmem:[#allocation1 + $0x10] sm:$0xff pattern:$0x75316420] }
 0x9de   : > { %v2519_v21 = vpop.permute.xlu0 %2518 }
 0x9e6   : > { %v2583_v34 = vpop.permute.xlu0 %2582 }
 0xa02   : > { %v2475_v10 = vpop.xlane.xlu2 %2474 }
 0xa03   : > { %v2489_v54 = vmul.f32 0.00390625, %v2475_v10 }
 0xa04   : > { %v2488_v39 = vpop.xlane.xlu1 %2487 }
 0xa05   : > { %v2490_v41 = vmul.f32 0.00390625, %v2488_v39  ;;  %v2491_v12 = vmul.f32 %v2489_v54, %v2489_v54  ;;  %v2494_v11 = vsub.f32 %v2463_v23, %v2489_v54  ;;  %v2495_v16 = vsub.f32 %v2464_v25, %v2489_v54 }
 0xa06   : > { %v2496_v18 = vsub.f32 %v2465_v26, %v2489_v54 }
 0xa07   : > { %v2492_v46 = vsub.f32 %v2490_v41, %v2491_v12 }
 0xa09   : > { %v2493_v58 = vmax.f32 %v2492_v46, 0.0 }
 0xa0b   : > { %v2497_v55 = vadd.f32 1e-05, %v2493_v58 }
 0xa0d   : > { %2917 = vrsqrt.f32 %v2497_v55  ;;  %vm2504_vm1 = vweird.f32 %v2497_v55 }
 0xa13   : > { %v2918_v52 = vpop.eup %2917 }
 0xa14   : > { %v2499_v62 = vmul.f32 %v2918_v52, %v2497_v55  ;;  %vm2505_vm3 = vweird.f32 %v2918_v52 }
 0xa15   : > { %vm2506_vm14 = vmor %vm2504_vm1, %vm2505_vm3 }
 0xa16   : > { %v2500_v63 = vmul.f32 %v2918_v52, %v2499_v62 }
 0xa18   : > { %v2501_v4 = vmul.f32 0.5, %v2500_v63 }
 0xa1a   : > { %v2502_v6 = vsub.f32 1.5, %v2501_v4 }
 0xa1c   : > { %v2503_v0 = vmul.f32 %v2918_v52, %v2502_v6 }
 0xa1e   : > { %v2507_v60 = vsel %vm2506_vm14, %v2918_v52, %v2503_v0 }
 0xa1f   : > { %v2508_v57 = vmul.f32 %v2507_v60, %v2494_v11  ;;  %v2509_v15 = vmul.f32 %v2507_v60, %v2495_v16  ;;  %v2510_v61 = vmul.f32 %v2507_v60, %v2496_v18 }
 0xa21   : > { %v2512_v56 = vpack.c.bf16 %v2508_v57, %v2508_v57  ;;  %v2513_v19 = vpack.c.bf16 %v2509_v15, %v2509_v15  ;;  %v2514_v20 = vpack.c.bf16 %v2510_v61, %v2510_v61 }
 0xa23   : > { %v2525_v45 = vsel %vm3875_vm5, %v2512_v56, 0  ;;  %v2528_v49 = vsel %vm3887_vm6, %v2513_v19, 0  ;;  %v2531_v14 = vsel %vm3888_vm10, %v2514_v20, 0 }
 0xa24   : > { %2540 = vmatpush.bf16.msrb.mxu0 %v2525_v45  ;;  %2553 = vmatpush.bf16.msrb.mxu1 %v2528_v49 }
 0xa25   : > { %2566 = vmatpush.bf16.msrb.mxu2 %v2531_v14 }
 0xa27   : > { %2822 = vmatmul.msk.bf16.vlgmr.msrb.gmra.mxu0 %vm3878_vm0, %v2511_v3  ;;  %2823 = vmatmul.msk.bf16.vlgmr.msrb.gmra.mxu1 %vm3889_vm7, %v2511_v3 }
 0xa28   : > { %2824 = vmatmul.msk.bf16.vlgmr.msrb.gmra.mxu2 %vm3890_vm12, %v2511_v3 }
 0xaa4   : > { %v2542_v5 = vpop.f32.mrf.mxu0  ;;  %v2555_v50 = vpop.f32.mrf.mxu1 }
 0xaa5   : > { %v2543_v23 = vadd.f32 %v2542_v5, %v2519_v21  ;;  %v2556_v9 = vadd.f32 %v2555_v50, %v2519_v21 }
 0xaa7   : > { %v2572_v7 = vmax.f32 %v2543_v23, 0.0  ;;  %v2573_v22 = vmax.f32 %v2556_v9, 0.0 }
 0xaa9   : > { %v2576_v17 = vpack.c.bf16 %v2572_v7, %v2572_v7  ;;  %v2577_v24 = vpack.c.bf16 %v2573_v22, %v2573_v22 }
 0xaab   : > { %v2568_v59 = vpop.f32.mrf.mxu2  ;;  %v2589_v25 = vsel %vm3891_vm11, %v2576_v17, 0  ;;  %v2592_v13 = vsel %vm3892_vm9, %v2577_v24, 0 }
 0xaac   : > { %v2569_v26 = vadd.f32 %v2568_v59, %v2519_v21  ;;  %v2544_v27 = vpop.f32.mrf.mxu0  ;;  %v2557_v28 = vpop.f32.mrf.mxu1  ;;  %2604 = vmatpush.bf16.msrb.mxu3 %v2589_v25  ;;  %2617 = vmatpush.bf16.msra.mxu0 %v2592_v13 }
 0xaae   : > { %v2574_v30 = vmax.f32 %v2569_v26, 0.0 }
 0xaaf   : > { %2825 = vmatmul.msk.bf16.vlgmr.msrb.gmra.mxu3 %vm1551_vm15, %v2575_v29  ;;  %2826 = vmatmul.msk.bf16.vlgmr.msra.gmra.mxu0 %vm1551_vm15, %v2575_v29 }
 0xab0   : > { %v2578_v31 = vpack.c.bf16 %v2574_v30, %v2574_v30 }
 0xab2   : > { %v2595_v32 = vsel %vm3893_vm4, %v2578_v31, 0 }
 0xab3   : > { %v2570_v33 = vpop.f32.mrf.mxu2  ;;  %2630 = vmatpush.bf16.msra.mxu1 %v2595_v32 }
 0xab6   : > { %2827 = vmatmul.msk.bf16.vlgmr.msra.gmra.mxu1 %vm1551_vm15, %v2575_v29  ;;  %vm3895_vm15 = vmmov %vm3884_vm2 }
 0xb2c   : > { %v2619_v35 = vpop.f32.mrf.mxu0 }
 0xb2d   : > { %v2620_v1 = vadd.f32 %v2619_v35, %v2583_v34 }
 0xb2f   : > { %v2637_v2 = vmax.f32 %v2620_v1, 0.0 }
 0xb31   : > { %v2649_v37 = vadd.f32 %v2643_v36, %v2637_v2 }
 0xb32   : > { %v2606_v8 = vpop.f32.mrf.mxu3 }
 0xb33   : > { %v2607_v40 = vadd.f32 %v2606_v8, %v2583_v34  ;;  %v2632_v42 = vpop.f32.mrf.mxu1  ;;  %v2653_v54 = vrot.slane %v2649_v37, 4 }
 0xb34   : > { %v2633_v47 = vadd.f32 %v2632_v42, %v2583_v34  ;;  %v2621_v48 = vpop.f32.mrf.mxu0 }
 0xb35   : > { %v2636_v43 = vmax.f32 %v2607_v40, 0.0 }
 0xb36   : > { %v2638_v10 = vmax.f32 %v2633_v47, 0.0 }
 0xb37   : > { %v2648_v39 = vadd.f32 %v2642_v44, %v2636_v43 }
 0xb38   : > { %v2650_v41 = vadd.f32 %v2644_v53, %v2638_v10 }
 0xb39   : > { %v2654_v12 = vsel %vm3895_vm15, %v2648_v39, %v2653_v54 }
 0xb3a   : > { %2656 = vst [vmem:[%s474_s23] sm:$0xff] %v2654_v12  ;;  %v2608_v46 = vpop.f32.mrf.mxu3 }
 0xb3b   : > { %2657 = vst [vmem:[%s474_s23 + $0x8] sm:$0xf] %v2650_v41  ;;  %v2634_v38 = vpop.f32.mrf.mxu1 }
 0xb3c PF: > { %s23_s25 = sadd.s32 1, %s2925_s25  }
 0xb3d   : > { %p20_p4 = scmp.ge.s32.totalorder %s23_s25, 4  }
 0xb3f   :  { %22 = sbr.rel (!%p20_p4) target bundleno = 1 (0x1), region = 135 }

</bundles_post_ra>
